<compile_context>
chip_gen: v7x
topology: tpu7x:2x2x1
jax: 0.10.0
libtpu: 0.0.40
codegen_flags: <defaults>
</compile_context>

<pallas_src>
import functools

import jax
import jax.numpy as jnp
from jax import lax
from jax.experimental import pallas as pl
from jax.experimental.pallas import tpu as pltpu


# --------------------------------------------------------------------------
# Fused kernel: K-tiled image + (pre-pooled) event projections on the MXU
# (bf16 operands, f32 accumulate); on the last K step: L2 norms, fused
# CoCoOp-style bias prompts and a single stacked text projection.
# --------------------------------------------------------------------------
def _fused_kernel(ximg_ref, xev_ref, wimg_ref, wev_ref, fw_ref,
                  ctx_ref, cls_ref, wmeta_ref, wtext_ref,
                  img_out, ev_out, txt_e_out, txt_im_out,
                  acc_img, acc_ev,
                  *, use_image_bias, use_event_bias):
    k = pl.program_id(0)

    @pl.when(k == 0)
    def _init():
        acc_img[...] = jnp.zeros_like(acc_img)
        acc_ev[...] = jnp.zeros_like(acc_ev)

    # Masked temporal mean applied per tile BEFORE the projection (commutes
    # with the linear projection).  fw already encodes mask / clamp(nf, 1).
    pooled_tile = jnp.dot(fw_ref[...], xev_ref[...],
                          preferred_element_type=jnp.float32)        # (B, tk)

    acc_img[...] += jnp.dot(ximg_ref[...], wimg_ref[...],
                            preferred_element_type=jnp.float32)      # (B, D)
    acc_ev[...] += jnp.dot(pooled_tile.astype(jnp.bfloat16), wev_ref[...],
                           preferred_element_type=jnp.float32)       # (B, D)

    @pl.when(k == pl.num_programs(0) - 1)
    def _epilogue():
        eps = 1e-12

        def l2norm(x):
            return x * lax.rsqrt(jnp.sum(x * x, axis=-1, keepdims=True) + eps)

        img_f = l2norm(acc_img[...])                                 # (B, D)
        ev_f = l2norm(acc_ev[...])                                   # (B, D)

        n_cls = cls_ref.shape[0]
        ctx = ctx_ref[...]                                           # (n_ctx, Cd)
        ctx_mean = jnp.sum(ctx, axis=0, keepdims=True) * (1.0 / ctx.shape[0])
        pooled = cls_ref[...] + ctx_mean                             # (n_cls, Cd)

        # CoCoOp-style bias from the first batch element (Text_Prompts[0]);
        # both branches share a single (2, D) x (D, Cd) meta-net matmul.
        prompts_e = pooled
        prompts_im = pooled
        if use_image_bias or use_event_bias:
            feats2 = jnp.concatenate([ev_f[0:1, :], img_f[0:1, :]], axis=0)
            bias2 = jnp.dot(feats2.astype(jnp.bfloat16), wmeta_ref[...],
                            preferred_element_type=jnp.float32)      # (2, Cd)
            if use_event_bias:
                prompts_e = pooled + bias2[0:1, :]
            if use_image_bias:
                prompts_im = pooled + bias2[1:2, :]

        # Single stacked text projection for both branches.
        prompts = jnp.concatenate([prompts_e, prompts_im], axis=0)   # (2*n_cls, Cd)
        txt = jnp.dot(prompts.astype(jnp.bfloat16), wtext_ref[...],
                      preferred_element_type=jnp.float32)            # (2*n_cls, Dout)
        txt = l2norm(txt)

        img_out[...] = img_f.astype(img_out.dtype)
        ev_out[...] = ev_f.astype(ev_out.dtype)
        txt_e_out[...] = txt[0:n_cls, :].astype(txt_e_out.dtype)
        txt_im_out[...] = txt[n_cls:2 * n_cls, :].astype(txt_im_out.dtype)


# --------------------------------------------------------------------------
# Per-generation VMEM budgeting and K-tile selection.
# --------------------------------------------------------------------------
def _vmem_limit_bytes():
    # Conservative fallback = v7x per-TC VMEM; query the device when possible.
    phys = 64 * 1024 * 1024
    try:
        info = pltpu.get_tpu_info()
        cap = getattr(info, "vmem_capacity_bytes", None)
        if cap:
            phys = int(cap)
    except Exception:
        pass
    # ~25% headroom for compiler-internal scratch, invariant inputs, outputs.
    return min(phys * 3 // 4, 100 * 1024 * 1024)


def _pick_tk(F, D, B, T, budget_bytes):
    def per_step_bytes(tk, nbuf=2):
        # Double-buffered bf16 streams: image acts, event acts, two weight tiles.
        elems = B * tk + B * T * tk + 2 * tk * D
        return elems * 2 * nbuf

    for tk in (4096, 2048, 1024, 512, 256, 128):
        if F % tk == 0 and per_step_bytes(tk) <= budget_bytes:
            return tk
    return F  # fall back: single K step, block == full extent (always legal)


def _stream_spec(shape, index_map, kt):
    # Deeper pipelining on the dominant weight streams only pays off when
    # there are enough K steps; inactive (default double-buffer) otherwise.
    if kt >= 3 and hasattr(pl, "Buffered"):
        return pl.BlockSpec(shape, index_map, pipeline_mode=pl.Buffered(3))
    return pl.BlockSpec(shape, index_map)


# --------------------------------------------------------------------------
# EventCLIP.forward
# --------------------------------------------------------------------------
def event_clip_forward(params, events, image, class_idxs, real_num_frame,
                       use_image_bias=True, use_event_bias=True):
    B, T = events.shape[0], events.shape[1]

    # Glue: flatten NCHW / NTCHW so the feature axis is the lane (last) dim;
    # keep the big streamed tensors in bf16 in HBM.
    img_flat = image.reshape(B, -1).astype(jnp.bfloat16)              # (B, F)
    ev_flat = events.reshape(B * T, -1).astype(jnp.bfloat16)          # (B*T, F)
    F = img_flat.shape[1]
    assert ev_flat.shape[1] == F

    w_img = params["w_img"].astype(jnp.bfloat16)                      # (F, D)
    w_ev = params["w_ev"].astype(jnp.bfloat16)                        # (F, D)
    D = w_img.shape[1]

    ctx = params["ctx"].astype(jnp.float32)                           # (n_ctx, Cd)
    cls_sel = params["cls_emb"][class_idxs].astype(jnp.float32)       # glue: gather
    w_meta = params["w_meta"].astype(jnp.bfloat16)                    # (D, Cd)
    w_text = params["w_text"].astype(jnp.bfloat16)                    # (Cd, Dout)
    n_cls, Cd = cls_sel.shape
    d_out = w_text.shape[1]

    # Glue: frame weights for the masked temporal mean (block-diagonal,
    # already includes the 1/clamp(real_num_frame, 1) factor).  bf16: the
    # per-row scale cancels under the L2 norm, so rounding is harmless.
    nf = real_num_frame.astype(jnp.float32)
    mask = (jnp.arange(T, dtype=jnp.float32)[None, :] < nf[:, None]).astype(jnp.float32)
    fw_bt = mask / jnp.maximum(nf, 1.0)[:, None]                      # (B, T)
    eye = jnp.eye(B, dtype=jnp.float32)
    fw = (eye[:, :, None] * fw_bt[None, :, :]).reshape(B, B * T).astype(jnp.bfloat16)

    vmem_limit = _vmem_limit_bytes()
    tk = _pick_tk(F, D, B, T, budget_bytes=int(vmem_limit * 0.6))
    kt = max(F // tk, 1)

    kern = functools.partial(_fused_kernel,
                             use_image_bias=bool(use_image_bias),
                             use_event_bias=bool(use_event_bias))

    grid_spec = pltpu.PrefetchScalarGridSpec(
        num_scalar_prefetch=0,
        grid=(kt,),
        in_specs=[
            pl.BlockSpec((B, tk), lambda k: (0, k)),              # image activations
            pl.BlockSpec((B * T, tk), lambda k: (0, k)),          # event activations
            _stream_spec((tk, D), lambda k: (k, 0), kt),          # w_img (dominant stream)
            _stream_spec((tk, D), lambda k: (k, 0), kt),          # w_ev  (dominant stream)
            pl.BlockSpec((B, B * T), lambda k: (0, 0)),           # frame weights
            pl.BlockSpec((ctx.shape[0], Cd), lambda k: (0, 0)),   # ctx tokens
            pl.BlockSpec((n_cls, Cd), lambda k: (0, 0)),          # class embeddings
            pl.BlockSpec((D, Cd), lambda k: (0, 0)),              # meta-net
            pl.BlockSpec((Cd, d_out), lambda k: (0, 0)),          # text projection
        ],
        out_specs=[
            pl.BlockSpec((B, D), lambda k: (0, 0)),               # image features
            pl.BlockSpec((B, D), lambda k: (0, 0)),               # event features
            pl.BlockSpec((n_cls, d_out), lambda k: (0, 0)),       # text features (event bias)
            pl.BlockSpec((n_cls, d_out), lambda k: (0, 0)),       # text features (image bias)
        ],
        scratch_shapes=[
            pltpu.VMEM((B, D), jnp.float32),                      # image accumulator
            pltpu.VMEM((B, D), jnp.float32),                      # event accumulator
        ],
    )

    out_shapes = (
        jax.ShapeDtypeStruct((B, D), jnp.float32),
        jax.ShapeDtypeStruct((B, D), jnp.float32),
        jax.ShapeDtypeStruct((n_cls, d_out), jnp.float32),
        jax.ShapeDtypeStruct((n_cls, d_out), jnp.float32),
    )

    return pl.pallas_call(
        kern,
        out_shape=out_shapes,
        grid_spec=grid_spec,
        compiler_params=pltpu.CompilerParams(
            dimension_semantics=("arbitrary",),          # K is a reduction axis
            vmem_limit_bytes=int(vmem_limit),            # per-generation budget
        ),
    )(img_flat, ev_flat, w_img, w_ev, fw, ctx, cls_sel, w_meta, w_text)


# --------------------------------------------------------------------------
# Pure-JAX reference (PyTorch-faithful order: project-then-mask-mean, f32
# text path) for a correctness check.
# --------------------------------------------------------------------------
def _reference_forward(params, events, image, class_idxs, real_num_frame,
                       use_image_bias=True, use_event_bias=True):
    eps = 1e-12
    B, T = events.shape[0], events.shape[1]

    def l2norm(x):
        return x / jnp.sqrt(jnp.sum(x * x, axis=-1, keepdims=True) + eps)

    img_flat = image.reshape(B, -1).astype(jnp.bfloat16)
    ev_flat = events.reshape(B * T, -1).astype(jnp.bfloat16)

    img_f = l2norm(jnp.dot(img_flat, params["w_img"].astype(jnp.bfloat16),
                           preferred_element_type=jnp.float32))
    proj = jnp.dot(ev_flat, params["w_ev"].astype(jnp.bfloat16),
                   preferred_element_type=jnp.float32).reshape(B, T, -1)
    nf = real_num_frame.astype(jnp.float32)
    mask = (jnp.arange(T, dtype=jnp.float32)[None, :] < nf[:, None]).astype(jnp.float32)
    pooled = jnp.sum(proj * mask[:, :, None], axis=1) / jnp.maximum(nf, 1.0)[:, None]
    ev_f = l2norm(pooled)

    ctx = params["ctx"].astype(jnp.float32)
    cls_sel = params["cls_emb"][class_idxs].astype(jnp.float32)
    ctx_mean = jnp.mean(ctx, axis=0, keepdims=True)
    w_meta = params["w_meta"].astype(jnp.float32)
    w_text = params["w_text"].astype(jnp.float32)

    def text_branch(feat, use_bias):
        p = cls_sel + ctx_mean
        if use_bias:
            p = p + jnp.dot(feat[0:1, :], w_meta)
        return l2norm(jnp.dot(p, w_text))

    return img_f, ev_f, text_branch(ev_f, use_event_bias), text_branch(img_f, use_image_bias)


if __name__ == "__main__":
    # Small shapes; embedding / ctx dims chosen lane-dense (128), n_cls sublane
    # aligned (8).
    B, C, H, W = 2, 4, 16, 16
    T = 4                        # event frames
    F = C * H * W                # 1024 flattened feature dim
    D = 128                      # joint embedding dim (lane dense)
    CTX_DIM = 128                # textual context dim
    N_CTX = 4                    # number of context tokens
    N_CLS = 8                    # number of classes

    key = jax.random.PRNGKey(0)
    keys = jax.random.split(key, 8)

    # Deterministic synthetic parameters (module __init__ analogue); big
    # streamed weights live in bf16, small text-path params in f32.
    params = {
        "w_img": (jax.random.normal(keys[0], (F, D), jnp.float32) * 0.02).astype(jnp.bfloat16),
        "w_ev": (jax.random.normal(keys[1], (F, D), jnp.float32) * 0.02).astype(jnp.bfloat16),
        "w_meta": jax.random.normal(keys[2], (D, CTX_DIM), jnp.float32) * 0.02,
        "ctx": jax.random.normal(keys[3], (N_CTX, CTX_DIM), jnp.float32) * 0.02,
        "cls_emb": jax.random.normal(keys[4], (N_CLS, CTX_DIM), jnp.float32) * 0.02,
        "w_text": jax.random.normal(keys[5], (CTX_DIM, D), jnp.float32) * 0.02,
    }

    # Inputs (kept bf16 in HBM).
    image = jax.random.normal(keys[6], (B, C, H, W), jnp.float32).astype(jnp.bfloat16)   # NCHW
    events = jax.random.normal(keys[7], (B, T, C, H, W), jnp.float32).astype(jnp.bfloat16)
    class_idxs = jnp.arange(N_CLS, dtype=jnp.int32)
    real_num_frame = jnp.array([3, 4], dtype=jnp.int32)

    outs = event_clip_forward(params, events, image, class_idxs, real_num_frame,
                              use_image_bias=True, use_event_bias=True)
    outs = jax.block_until_ready(outs)

    img_f, ev_f, txt_e, txt_im = outs
    assert img_f.shape == (B, D) and ev_f.shape == (B, D)
    assert txt_e.shape == (N_CLS, D) and txt_im.shape == (N_CLS, D)

    # Every output is L2-normalized along dim=-1.
    for o in outs:
        n = jnp.linalg.norm(o.astype(jnp.float32), axis=-1)
        assert jnp.allclose(n, 1.0, atol=1e-3), n

    # Match the pure-JAX reference (kernel pools pre-projection and uses bf16
    # text-path operands, so allow small rounding-level differences).
    refs = _reference_forward(params, events, image, class_idxs, real_num_frame,
                              use_image_bias=True, use_event_bias=True)
    for got, ref in zip(outs, refs):
        assert jnp.allclose(got, ref, atol=2e-2), (got, ref)

    print("KERNEL_OK")
</pallas_src>

<mosaic_0001>
module attributes {stable_mosaic.version = 11 : i64} {
  func.func @_fused_kernel(%arg0: i32, %arg1: memref<2x1024xbf16, #tpu.memory_space<vmem>>, %arg2: memref<8x1024xbf16, #tpu.memory_space<vmem>>, %arg3: memref<1024x128xbf16, #tpu.memory_space<vmem>>, %arg4: memref<1024x128xbf16, #tpu.memory_space<vmem>>, %arg5: memref<2x8xbf16, #tpu.memory_space<vmem>>, %arg6: memref<4x128xf32, #tpu.memory_space<vmem>>, %arg7: memref<8x128xf32, #tpu.memory_space<vmem>>, %arg8: memref<128x128xbf16, #tpu.memory_space<vmem>>, %arg9: memref<128x128xbf16, #tpu.memory_space<vmem>>, %arg10: memref<2x128xf32, #tpu.memory_space<vmem>>, %arg11: memref<2x128xf32, #tpu.memory_space<vmem>>, %arg12: memref<8x128xf32, #tpu.memory_space<vmem>>, %arg13: memref<8x128xf32, #tpu.memory_space<vmem>>, %arg14: memref<2x128xf32, #tpu.memory_space<vmem>>, %arg15: memref<2x128xf32, #tpu.memory_space<vmem>>) attributes {dimension_semantics = [#tpu.dimension_semantics<arbitrary>], iteration_bounds = array<i64: 1>, scalar_prefetch = 0 : i64, scratch_operands = 2 : i64, tpu.core_type = #tpu.core_type<tc>, window_params = [{transform_indices = @transform_0, window_bounds = array<i64: 2, 1024>}, {transform_indices = @transform_1, window_bounds = array<i64: 8, 1024>}, {transform_indices = @transform_2, window_bounds = array<i64: 1024, 128>}, {transform_indices = @transform_3, window_bounds = array<i64: 1024, 128>}, {pipeline_mode = #tpu.pipeline_mode<synchronous>, transform_indices = @transform_4, window_bounds = array<i64: 2, 8>}, {pipeline_mode = #tpu.pipeline_mode<synchronous>, transform_indices = @transform_5, window_bounds = array<i64: 4, 128>}, {pipeline_mode = #tpu.pipeline_mode<synchronous>, transform_indices = @transform_6, window_bounds = array<i64: 8, 128>}, {pipeline_mode = #tpu.pipeline_mode<synchronous>, transform_indices = @transform_7, window_bounds = array<i64: 128, 128>}, {pipeline_mode = #tpu.pipeline_mode<synchronous>, transform_indices = @transform_8, window_bounds = array<i64: 128, 128>}, {pipeline_mode = #tpu.pipeline_mode<synchronous>, transform_indices = @transform_9, window_bounds = array<i64: 2, 128>}, {pipeline_mode = #tpu.pipeline_mode<synchronous>, transform_indices = @transform_10, window_bounds = array<i64: 2, 128>}, {pipeline_mode = #tpu.pipeline_mode<synchronous>, transform_indices = @transform_11, window_bounds = array<i64: 8, 128>}, {pipeline_mode = #tpu.pipeline_mode<synchronous>, transform_indices = @transform_12, window_bounds = array<i64: 8, 128>}]} {
    %c0_i32 = arith.constant 0 : i32
    %0 = arith.cmpi eq, %arg0, %c0_i32 : i32
    %1 = arith.extui %0 : i1 to i32
    %c0_i32_0 = arith.constant 0 : i32
    %2 = arith.cmpi ne, %1, %c0_i32_0 : i32
    scf.if %2 {
      %cst_22 = arith.constant 0.000000e+00 : f32
      %21 = vector.broadcast %cst_22 : f32 to vector<2x128xf32>
      %c0_23 = arith.constant 0 : index
      %c0_24 = arith.constant 0 : index
      %22 = vector.load %arg14[%c0_23, %c0_24] : memref<2x128xf32, #tpu.memory_space<vmem>>, vector<2x128xf32>
      tpu.vector_store %arg14[%c0_23, %c0_24], %21 {strides = array<i32>} : memref<2x128xf32, #tpu.memory_space<vmem>>, vector<2x128xf32>,
      %cst_25 = arith.constant 0.000000e+00 : f32
      %23 = vector.broadcast %cst_25 : f32 to vector<2x128xf32>
      %c0_26 = arith.constant 0 : index
      %c0_27 = arith.constant 0 : index
      %24 = vector.load %arg15[%c0_26, %c0_27] : memref<2x128xf32, #tpu.memory_space<vmem>>, vector<2x128xf32>
      tpu.vector_store %arg15[%c0_26, %c0_27], %23 {strides = array<i32>} : memref<2x128xf32, #tpu.memory_space<vmem>>, vector<2x128xf32>,
    } else {
    }
    %c0 = arith.constant 0 : index
    %c0_1 = arith.constant 0 : index
    %3 = vector.load %arg5[%c0, %c0_1] : memref<2x8xbf16, #tpu.memory_space<vmem>>, vector<2x8xbf16>
    %c0_2 = arith.constant 0 : index
    %c0_3 = arith.constant 0 : index
    %4 = vector.load %arg2[%c0_2, %c0_3] : memref<8x1024xbf16, #tpu.memory_space<vmem>>, vector<8x1024xbf16>
    %cst = arith.constant dense<0.000000e+00> : vector<2x1024xf32>
    %5 = tpu.matmul %3, %4, %cst {dimension_numbers = #tpu.dot_dimension_numbers<[1], [0], [0], [1], [0, 0, 1, 1], [], []>} : vector<2x8xbf16>, vector<8x1024xbf16>, vector<2x1024xf32> -> vector<2x1024xf32>
    %c0_4 = arith.constant 0 : index
    %c0_5 = arith.constant 0 : index
    %6 = vector.load %arg14[%c0_4, %c0_5] : memref<2x128xf32, #tpu.memory_space<vmem>>, vector<2x128xf32>
    %c0_6 = arith.constant 0 : index
    %c0_7 = arith.constant 0 : index
    %7 = vector.load %arg1[%c0_6, %c0_7] : memref<2x1024xbf16, #tpu.memory_space<vmem>>, vector<2x1024xbf16>
    %c0_8 = arith.constant 0 : index
    %c0_9 = arith.constant 0 : index
    %8 = vector.load %arg3[%c0_8, %c0_9] : memref<1024x128xbf16, #tpu.memory_space<vmem>>, vector<1024x128xbf16>
    %cst_10 = arith.constant dense<0.000000e+00> : vector<2x128xf32>
    %9 = tpu.matmul %7, %8, %cst_10 {dimension_numbers = #tpu.dot_dimension_numbers<[1], [0], [0], [1], [0, 0, 1, 1], [], []>} : vector<2x1024xbf16>, vector<1024x128xbf16>, vector<2x128xf32> -> vector<2x128xf32>
    %10 = arith.addf %6, %9 : vector<2x128xf32>
    %c0_11 = arith.constant 0 : index
    %c0_12 = arith.constant 0 : index
    %11 = vector.load %arg14[%c0_11, %c0_12] : memref<2x128xf32, #tpu.memory_space<vmem>>, vector<2x128xf32>
    tpu.vector_store %arg14[%c0_11, %c0_12], %10 {strides = array<i32>} : memref<2x128xf32, #tpu.memory_space<vmem>>, vector<2x128xf32>,
    %c0_13 = arith.constant 0 : index
    %c0_14 = arith.constant 0 : index
    %12 = vector.load %arg15[%c0_13, %c0_14] : memref<2x128xf32, #tpu.memory_space<vmem>>, vector<2x128xf32>
    %13 = arith.truncf %5 : vector<2x1024xf32> to vector<2x1024xbf16>
    %c0_15 = arith.constant 0 : index
    %c0_16 = arith.constant 0 : index
    %14 = vector.load %arg4[%c0_15, %c0_16] : memref<1024x128xbf16, #tpu.memory_space<vmem>>, vector<1024x128xbf16>
    %cst_17 = arith.constant dense<0.000000e+00> : vector<2x128xf32>
    %15 = tpu.matmul %13, %14, %cst_17 {dimension_numbers = #tpu.dot_dimension_numbers<[1], [0], [0], [1], [0, 0, 1, 1], [], []>} : vector<2x1024xbf16>, vector<1024x128xbf16>, vector<2x128xf32> -> vector<2x128xf32>
    %16 = arith.addf %12, %15 : vector<2x128xf32>
    %c0_18 = arith.constant 0 : index
    %c0_19 = arith.constant 0 : index
    %17 = vector.load %arg15[%c0_18, %c0_19] : memref<2x128xf32, #tpu.memory_space<vmem>>, vector<2x128xf32>
    tpu.vector_store %arg15[%c0_18, %c0_19], %16 {strides = array<i32>} : memref<2x128xf32, #tpu.memory_space<vmem>>, vector<2x128xf32>,
    %c0_i32_20 = arith.constant 0 : i32
    %18 = arith.cmpi eq, %arg0, %c0_i32_20 : i32
    %19 = arith.extui %18 : i1 to i32
    %c0_i32_21 = arith.constant 0 : i32
    %20 = arith.cmpi ne, %19, %c0_i32_21 : i32
    scf.if %20 {
      %c0_22 = arith.constant 0 : index
      %c0_23 = arith.constant 0 : index
      %21 = vector.load %arg14[%c0_22, %c0_23] : memref<2x128xf32, #tpu.memory_space<vmem>>, vector<2x128xf32>
      %22 = arith.mulf %21, %21 : vector<2x128xf32>
      %cst_24 = arith.constant dense<0.000000e+00> : vector<2xf32>
      %23 = vector.multi_reduction <add>, %22, %cst_24 [1] : vector<2x128xf32> to vector<2xf32>
      %24 = vector.shape_cast %23 : vector<2xf32> to vector<2x1xf32>
      %cst_25 = arith.constant 9.99999996E-13 : f32
      %25 = vector.broadcast %cst_25 : f32 to vector<2x1xf32>
      %26 = arith.addf %24, %25 : vector<2x1xf32>
      %27 = math.rsqrt %26 : vector<2x1xf32>
      %28 = vector.broadcast %27 : vector<2x1xf32> to vector<2x128xf32>
      %29 = arith.mulf %21, %28 : vector<2x128xf32>
      %c0_26 = arith.constant 0 : index
      %c0_27 = arith.constant 0 : index
      %30 = vector.load %arg15[%c0_26, %c0_27] : memref<2x128xf32, #tpu.memory_space<vmem>>, vector<2x128xf32>
      %31 = arith.mulf %30, %30 : vector<2x128xf32>
      %cst_28 = arith.constant dense<0.000000e+00> : vector<2xf32>
      %32 = vector.multi_reduction <add>, %31, %cst_28 [1] : vector<2x128xf32> to vector<2xf32>
      %33 = vector.shape_cast %32 : vector<2xf32> to vector<2x1xf32>
      %cst_29 = arith.constant 9.99999996E-13 : f32
      %34 = vector.broadcast %cst_29 : f32 to vector<2x1xf32>
      %35 = arith.addf %33, %34 : vector<2x1xf32>
      %36 = math.rsqrt %35 : vector<2x1xf32>
      %37 = vector.broadcast %36 : vector<2x1xf32> to vector<2x128xf32>
      %38 = arith.mulf %30, %37 : vector<2x128xf32>
      %c0_30 = arith.constant 0 : index
      %c0_31 = arith.constant 0 : index
      %39 = vector.load %arg6[%c0_30, %c0_31] : memref<4x128xf32, #tpu.memory_space<vmem>>, vector<4x128xf32>
      %cst_32 = arith.constant dense<0.000000e+00> : vector<128xf32>
      %40 = vector.multi_reduction <add>, %39, %cst_32 [0] : vector<4x128xf32> to vector<128xf32>
      %41 = vector.shape_cast %40 : vector<128xf32> to vector<1x128xf32>
      %cst_33 = arith.constant 2.500000e-01 : f32
      %42 = vector.broadcast %cst_33 : f32 to vector<1x128xf32>
      %43 = arith.mulf %41, %42 : vector<1x128xf32>
      %c0_34 = arith.constant 0 : index
      %c0_35 = arith.constant 0 : index
      %44 = vector.load %arg7[%c0_34, %c0_35] : memref<8x128xf32, #tpu.memory_space<vmem>>, vector<8x128xf32>
      %45 = vector.broadcast %43 : vector<1x128xf32> to vector<8x128xf32>
      %46 = arith.addf %44, %45 : vector<8x128xf32>
      %47 = vector.extract_strided_slice %38 {offsets = [0, 0], sizes = [1, 128], strides = [1, 1]} : vector<2x128xf32> to vector<1x128xf32>
      %48 = vector.extract_strided_slice %29 {offsets = [0, 0], sizes = [1, 128], strides = [1, 1]} : vector<2x128xf32> to vector<1x128xf32>
      %49 = tpu.concatenate %47, %48 in 0 : vector<1x128xf32>, vector<1x128xf32> -> vector<2x128xf32>
      %50 = arith.truncf %49 : vector<2x128xf32> to vector<2x128xbf16>
      %c0_36 = arith.constant 0 : index
      %c0_37 = arith.constant 0 : index
      %51 = vector.load %arg8[%c0_36, %c0_37] : memref<128x128xbf16, #tpu.memory_space<vmem>>, vector<128x128xbf16>
      %cst_38 = arith.constant dense<0.000000e+00> : vector<2x128xf32>
      %52 = tpu.matmul %50, %51, %cst_38 {dimension_numbers = #tpu.dot_dimension_numbers<[1], [0], [0], [1], [0, 0, 1, 1], [], []>} : vector<2x128xbf16>, vector<128x128xbf16>, vector<2x128xf32> -> vector<2x128xf32>
      %53 = vector.extract_strided_slice %52 {offsets = [0, 0], sizes = [1, 128], strides = [1, 1]} : vector<2x128xf32> to vector<1x128xf32>
      %54 = vector.broadcast %53 : vector<1x128xf32> to vector<8x128xf32>
      %55 = arith.addf %46, %54 : vector<8x128xf32>
      %56 = vector.extract_strided_slice %52 {offsets = [1, 0], sizes = [1, 128], strides = [1, 1]} : vector<2x128xf32> to vector<1x128xf32>
      %57 = vector.broadcast %56 : vector<1x128xf32> to vector<8x128xf32>
      %58 = arith.addf %46, %57 : vector<8x128xf32>
      %59 = tpu.concatenate %55, %58 in 0 : vector<8x128xf32>, vector<8x128xf32> -> vector<16x128xf32>
      %60 = arith.truncf %59 : vector<16x128xf32> to vector<16x128xbf16>
      %c0_39 = arith.constant 0 : index
      %c0_40 = arith.constant 0 : index
      %61 = vector.load %arg9[%c0_39, %c0_40] : memref<128x128xbf16, #tpu.memory_space<vmem>>, vector<128x128xbf16>
      %cst_41 = arith.constant dense<0.000000e+00> : vector<16x128xf32>
      %62 = tpu.matmul %60, %61, %cst_41 {dimension_numbers = #tpu.dot_dimension_numbers<[1], [0], [0], [1], [0, 0, 1, 1], [], []>} : vector<16x128xbf16>, vector<128x128xbf16>, vector<16x128xf32> -> vector<16x128xf32>
      %63 = arith.mulf %62, %62 : vector<16x128xf32>
      %cst_42 = arith.constant dense<0.000000e+00> : vector<16xf32>
      %64 = vector.multi_reduction <add>, %63, %cst_42 [1] : vector<16x128xf32> to vector<16xf32>
      %65 = vector.shape_cast %64 : vector<16xf32> to vector<16x1xf32>
      %cst_43 = arith.constant 9.99999996E-13 : f32
      %66 = vector.broadcast %cst_43 : f32 to vector<16x1xf32>
      %67 = arith.addf %65, %66 : vector<16x1xf32>
      %68 = math.rsqrt %67 : vector<16x1xf32>
      %69 = vector.broadcast %68 : vector<16x1xf32> to vector<16x128xf32>
      %70 = arith.mulf %62, %69 : vector<16x128xf32>
      %c0_44 = arith.constant 0 : index
      %c0_45 = arith.constant 0 : index
      %71 = vector.load %arg10[%c0_44, %c0_45] : memref<2x128xf32, #tpu.memory_space<vmem>>, vector<2x128xf32>
      tpu.vector_store %arg10[%c0_44, %c0_45], %29 {strides = array<i32>} : memref<2x128xf32, #tpu.memory_space<vmem>>, vector<2x128xf32>,
      %c0_46 = arith.constant 0 : index
      %c0_47 = arith.constant 0 : index
      %72 = vector.load %arg11[%c0_46, %c0_47] : memref<2x128xf32, #tpu.memory_space<vmem>>, vector<2x128xf32>
      tpu.vector_store %arg11[%c0_46, %c0_47], %38 {strides = array<i32>} : memref<2x128xf32, #tpu.memory_space<vmem>>, vector<2x128xf32>,
      %73 = vector.extract_strided_slice %70 {offsets = [0, 0], sizes = [8, 128], strides = [1, 1]} : vector<16x128xf32> to vector<8x128xf32>
      %c0_48 = arith.constant 0 : index
      %c0_49 = arith.constant 0 : index
      %74 = vector.load %arg12[%c0_48, %c0_49] : memref<8x128xf32, #tpu.memory_space<vmem>>, vector<8x128xf32>
      tpu.vector_store %arg12[%c0_48, %c0_49], %73 {strides = array<i32>} : memref<8x128xf32, #tpu.memory_space<vmem>>, vector<8x128xf32>,
      %75 = vector.extract_strided_slice %70 {offsets = [8, 0], sizes = [8, 128], strides = [1, 1]} : vector<16x128xf32> to vector<8x128xf32>
      %c0_50 = arith.constant 0 : index
      %c0_51 = arith.constant 0 : index
      %76 = vector.load %arg13[%c0_50, %c0_51] : memref<8x128xf32, #tpu.memory_space<vmem>>, vector<8x128xf32>
      tpu.vector_store %arg13[%c0_50, %c0_51], %75 {strides = array<i32>} : memref<8x128xf32, #tpu.memory_space<vmem>>, vector<8x128xf32>,
    } else {
    }
    return
  }
  func.func @transform_0(%arg0: i32) -> (i32, i32) {
    %c0_i32 = arith.constant 0 : i32
    %c0_i32_0 = arith.constant 0 : i32
    return %c0_i32, %arg0 : i32, i32
  }
  func.func @transform_1(%arg0: i32) -> (i32, i32) {
    %c0_i32 = arith.constant 0 : i32
    %c0_i32_0 = arith.constant 0 : i32
    return %c0_i32, %arg0 : i32, i32
  }
  func.func @transform_2(%arg0: i32) -> (i32, i32) {
    %c0_i32 = arith.constant 0 : i32
    %c0_i32_0 = arith.constant 0 : i32
    return %arg0, %c0_i32 : i32, i32
  }
  func.func @transform_3(%arg0: i32) -> (i32, i32) {
    %c0_i32 = arith.constant 0 : i32
    %c0_i32_0 = arith.constant 0 : i32
    return %arg0, %c0_i32 : i32, i32
  }
  func.func @transform_4(%arg0: i32) -> (i32, i32) {
    %c0_i32 = arith.constant 0 : i32
    %c0_i32_0 = arith.constant 0 : i32
    %c0_i32_1 = arith.constant 0 : i32
    return %c0_i32, %c0_i32_0 : i32, i32
  }
  func.func @transform_5(%arg0: i32) -> (i32, i32) {
    %c0_i32 = arith.constant 0 : i32
    %c0_i32_0 = arith.constant 0 : i32
    %c0_i32_1 = arith.constant 0 : i32
    return %c0_i32, %c0_i32_0 : i32, i32
  }
  func.func @transform_6(%arg0: i32) -> (i32, i32) {
    %c0_i32 = arith.constant 0 : i32
    %c0_i32_0 = arith.constant 0 : i32
    %c0_i32_1 = arith.constant 0 : i32
    return %c0_i32, %c0_i32_0 : i32, i32
  }
  func.func @transform_7(%arg0: i32) -> (i32, i32) {
    %c0_i32 = arith.constant 0 : i32
    %c0_i32_0 = arith.constant 0 : i32
    %c0_i32_1 = arith.constant 0 : i32
    return %c0_i32, %c0_i32_0 : i32, i32
  }
  func.func @transform_8(%arg0: i32) -> (i32, i32) {
    %c0_i32 = arith.constant 0 : i32
    %c0_i32_0 = arith.constant 0 : i32
    %c0_i32_1 = arith.constant 0 : i32
    return %c0_i32, %c0_i32_0 : i32, i32
  }
  func.func @transform_9(%arg0: i32) -> (i32, i32) {
    %c0_i32 = arith.constant 0 : i32
    %c0_i32_0 = arith.constant 0 : i32
    %c0_i32_1 = arith.constant 0 : i32
    return %c0_i32, %c0_i32_0 : i32, i32
  }
  func.func @transform_10(%arg0: i32) -> (i32, i32) {
    %c0_i32 = arith.constant 0 : i32
    %c0_i32_0 = arith.constant 0 : i32
    %c0_i32_1 = arith.constant 0 : i32
    return %c0_i32, %c0_i32_0 : i32, i32
  }
  func.func @transform_11(%arg0: i32) -> (i32, i32) {
    %c0_i32 = arith.constant 0 : i32
    %c0_i32_0 = arith.constant 0 : i32
    %c0_i32_1 = arith.constant 0 : i32
    return %c0_i32, %c0_i32_0 : i32, i32
  }
  func.func @transform_12(%arg0: i32) -> (i32, i32) {
    %c0_i32 = arith.constant 0 : i32
    %c0_i32_0 = arith.constant 0 : i32
    %c0_i32_1 = arith.constant 0 : i32
    return %c0_i32, %c0_i32_0 : i32, i32
  }
}

</mosaic_0001>

<bundles_post_ra>
// kernel: tpu_custom_call.1
= control target key start
LH: loop header
LB: loop body
LE: loop exit
PB: predicated region body
PF: predicated region fallthrough
CT: control target
= control target key end

     0   :  { %18 = vsyncpa [#allocation5], 0  ;;  %s3188_s0 = inlined_call_operand.hbm [shape: bf16[2,1024], index: 0, kind: input, shape index: {}]   ;;  %s3189_s1 = inlined_call_operand.hbm [shape: bf16[8,1024], index: 1, kind: input, shape index: {}]   ;;  %s3190_s2 = inlined_call_operand.hbm [shape: bf16[1024,128], index: 2, kind: input, shape index: {}]   ;;  %s3191_s3 = inlined_call_operand.hbm [shape: bf16[1024,128], index: 3, kind: input, shape index: {}]   ;;  %s3192_s4 = inlined_call_operand.vmem [shape: bf16[2,8], index: 4, kind: input, shape index: {}]   ;;  %s3193_s5 = inlined_call_operand.vmem [shape: f32[4,128], index: 5, kind: input, shape index: {}]   ;;  %s3194_s6 = inlined_call_operand.vmem [shape: f32[8,128], index: 6, kind: input, shape index: {}]   ;;  %s3195_s7 = inlined_call_operand.hbm [shape: bf16[128,128], index: 7, kind: input, shape index: {}]   ;;  %s3196_s8 = inlined_call_operand.hbm [shape: bf16[128,128], index: 8, kind: input, shape index: {}]   ;;  %s3197_s9 = inlined_call_operand.hbm [shape: f32[2,128], index: 9, kind: output, shape index: {0}]   ;;  %s3198_s10 = inlined_call_operand.hbm [shape: f32[2,128], index: 10, kind: output, shape index: {1}]   ;;  %s3199_s11 = inlined_call_operand.hbm [shape: f32[8,128], index: 11, kind: output, shape index: {2}]   ;;  %s3200_s12 = inlined_call_operand.hbm [shape: f32[8,128], index: 12, kind: output, shape index: {3}]  }
   0x1   :  { %19 = vsyncpa [#allocation8], 0 }
   0x2   :  { %20 = vsyncpa [#allocation11], 0 }
   0x3   :  { %21 = vsyncpa [#allocation14], 0 }
   0x4   :  { %22 = vsyncpa [#allocation6], 0 }
   0x5   :  { %23 = vsyncpa [#allocation17], 0 }
   0x6   :  { %24 = vsyncpa [#allocation20], 0  ;;  %s2896_s21 = smov [#allocation7]   ;;  %s2662_s25 = scalar_lea.hbm %s3189_s1, 512 }
   0x7   :  { %s41_s22 = sshll.u32 %s2896_s21, 4  ;;  %p2663_p0 = scmp.ne.s32.totalorder %s3189_s1, %s2662_s25  ;;  %s42_s22 = int_to_ptr.vmem [resolvable:$true] %s41_s22 }
   0x8   :  { %p2666_p1 = scmp.lt.u32.totalorder %s2662_s25, %s3189_s1 }
   0xa   :  { %p2668_p2 = pnand %p2666_p1, %p2663_p0 }
   0xc   :  { %2671 = shalt.err (!%p2668_p2)
}
   0xd   :  { %s2672_s30 = scalar_lea.vmem %s42_s22, 512  ;;  %p2677_p4 = scmp.lt.s32.totalorder %s42_s22, %s42_s22 }
   0xe   :  { %p2673_p3 = scmp.ne.s32.totalorder %s42_s22, %s2672_s30  ;;  %p2678_p5 = scmp.lt.s32.totalorder %s2672_s30, %s2672_s30 }
  0x10   :  { %p2679_p6 = por %p2678_p5, %p2677_p4 }
  0x12   :  { %p2680_p7 = pnand %p2679_p6, %p2673_p3 }
  0x14   :  { %2683 = shalt.err (!%p2680_p7)
}
  0x15   :  { %44 = dma.hbm_to_vmem [thread:$0]  %s3189_s1, 512, %s42_s22, [#allocation8]  }
  0x16   :  { %s2897_s15 = smov [#allocation10]   ;;  %s2898_s17 = smov [#allocation4]  }
  0x17   :  { %s62_s16 = sshll.u32 %s2897_s15, 4  ;;  %s31_s18 = sshll.u32 %s2898_s17, 4  ;;  %s63_s16 = int_to_ptr.vmem [resolvable:$true] %s62_s16  ;;  %s32_s18 = int_to_ptr.vmem [resolvable:$true] %s31_s18 }
  0x18   :  { %s2684_s21 = scalar_lea.hbm %s3191_s3, 8192 }
  0x19   :  { %p2685_p8 = scmp.ne.s32.totalorder %s3191_s3, %s2684_s21  ;;  %p2688_p9 = scmp.lt.u32.totalorder %s2684_s21, %s3191_s3 }
  0x1b   :  { %p2690_p10 = pnand %p2688_p9, %p2685_p8 }
  0x1d   :  { %2693 = shalt.err (!%p2690_p10)
}
  0x1e   :  { %s2694_s1 = scalar_lea.vmem %s63_s16, 8192  ;;  %p2699_p12 = scmp.lt.s32.totalorder %s63_s16, %s63_s16 }
  0x1f   :  { %p2695_p11 = scmp.ne.s32.totalorder %s63_s16, %s2694_s1  ;;  %p2700_p13 = scmp.lt.s32.totalorder %s2694_s1, %s2694_s1 }
  0x21   :  { %p2701_p0 = por %p2700_p13, %p2699_p12 }
  0x23   :  { %p2702_p1 = pnand %p2701_p0, %p2695_p11 }
  0x25   :  { %2705 = shalt.err (!%p2702_p1)
}
  0x26   :  { %s2899_s22 = smov 64   ;;  %s2900_s27 = smov 4  }
  0x27   :  { %68 = dma.hbm_to_vmem [thread:$0]  %s3191_s3, 8192, %s63_s16, [#allocation11], %s2899_s22, %s2899_s22, %s2900_s27  }
  0x28   :  { %s2706_s14 = scalar_lea.hbm %s3188_s0, 128 }
  0x29   :  { %p2707_p2 = scmp.ne.s32.totalorder %s3188_s0, %s2706_s14  ;;  %p2710_p3 = scmp.lt.u32.totalorder %s2706_s14, %s3188_s0 }
  0x2b   :  { %p2712_p4 = pnand %p2710_p3, %p2707_p2 }
  0x2d   :  { %2715 = shalt.err (!%p2712_p4)
}
  0x2e   :  { %s2716_s21 = scalar_lea.vmem %s32_s18, 128  ;;  %p2721_p6 = scmp.lt.s32.totalorder %s32_s18, %s32_s18 }
  0x2f   :  { %p2717_p5 = scmp.ne.s32.totalorder %s32_s18, %s2716_s21  ;;  %p2722_p7 = scmp.lt.s32.totalorder %s2716_s21, %s2716_s21 }
  0x31   :  { %p2723_p8 = por %p2722_p7, %p2721_p6 }
  0x33   :  { %p2724_p9 = pnand %p2723_p8, %p2717_p5 }
  0x35   :  { %2727 = shalt.err (!%p2724_p9)
}
  0x36   :  { %34 = dma.hbm_to_vmem [thread:$0]  %s3188_s0, 128, %s32_s18, [#allocation5]  }
  0x37   :  { %s2901_s23 = smov [#allocation9]   ;;  %s2902_s25 = smov [#allocation12]  }
  0x38   :  { %s50_s24 = sshll.u32 %s2901_s23, 4  ;;  %s80_s26 = sshll.u32 %s2902_s25, 4  ;;  %s51_s24 = int_to_ptr.vmem [resolvable:$true] %s50_s24  ;;  %s81_s26 = int_to_ptr.vmem [resolvable:$true] %s80_s26 }
  0x39   :  { %s2728_s29 = scalar_lea.hbm %s3190_s2, 8192 }
  0x3a   :  { %p2729_p10 = scmp.ne.s32.totalorder %s3190_s2, %s2728_s29  ;;  %p2732_p11 = scmp.lt.u32.totalorder %s2728_s29, %s3190_s2 }
  0x3c   :  { %p2734_p12 = pnand %p2732_p11, %p2729_p10 }
  0x3e   :  { %2737 = shalt.err (!%p2734_p12)
}
  0x3f   :  { %s2738_s0 = scalar_lea.vmem %s51_s24, 8192  ;;  %p2743_p0 = scmp.lt.s32.totalorder %s51_s24, %s51_s24 }
  0x40   :  { %p2739_p13 = scmp.ne.s32.totalorder %s51_s24, %s2738_s0  ;;  %p2744_p1 = scmp.lt.s32.totalorder %s2738_s0, %s2738_s0 }
  0x42   :  { %p2745_p2 = por %p2744_p1, %p2743_p0 }
  0x44   :  { %p2746_p3 = pnand %p2745_p2, %p2739_p13 }
  0x46   :  { %2749 = shalt.err (!%p2746_p3)
}
  0x47   :  { %56 = dma.hbm_to_vmem [thread:$0]  %s3190_s2, 8192, %s51_s24, [#allocation8], %s2899_s22, %s2899_s22, %s2900_s27  }
  0x48   :  { %s2750_s21 = scalar_lea.hbm %s3195_s7, 1024 }
  0x49   :  { %p2751_p4 = scmp.ne.s32.totalorder %s3195_s7, %s2750_s21  ;;  %p2754_p5 = scmp.lt.u32.totalorder %s2750_s21, %s3195_s7 }
  0x4b   :  { %p2756_p6 = pnand %p2754_p5, %p2751_p4 }
  0x4d   :  { %2759 = shalt.err (!%p2756_p6)
}
  0x4e   :  { %s2760_s1 = scalar_lea.vmem %s81_s26, 1024  ;;  %p2765_p8 = scmp.lt.s32.totalorder %s81_s26, %s81_s26 }
  0x4f   :  { %p2761_p7 = scmp.ne.s32.totalorder %s81_s26, %s2760_s1  ;;  %p2766_p9 = scmp.lt.s32.totalorder %s2760_s1, %s2760_s1 }
  0x51   :  { %p2767_p10 = por %p2766_p9, %p2765_p8 }
  0x53   :  { %p2768_p11 = pnand %p2767_p10, %p2761_p7 }
  0x55   :  { %2771 = shalt.err (!%p2768_p11)
}
  0x56   :  { %86 = dma.hbm_to_vmem [thread:$0]  %s3195_s7, 1024, %s81_s26, [#allocation11], %s2899_s22, %s2899_s22, %s2900_s27  }
  0x57   :  { %s2903_s28 = smov [#allocation13]   ;;  %s2772_s14 = scalar_lea.hbm %s3196_s8, 1024 }
  0x58   :  { %s92_s29 = sshll.u32 %s2903_s28, 4  ;;  %p2773_p12 = scmp.ne.s32.totalorder %s3196_s8, %s2772_s14  ;;  %s93_s29 = int_to_ptr.vmem [resolvable:$true] %s92_s29 }
  0x59   :  { %p2776_p13 = scmp.lt.u32.totalorder %s2772_s14, %s3196_s8 }
  0x5b   :  { %p2778_p0 = pnand %p2776_p13, %p2773_p12 }
  0x5d   :  { %2781 = shalt.err (!%p2778_p0)
}
  0x5e   :  { %s2782_s19 = scalar_lea.vmem %s93_s29, 1024  ;;  %p2787_p2 = scmp.lt.s32.totalorder %s93_s29, %s93_s29 }
  0x5f   :  { %p2783_p1 = scmp.ne.s32.totalorder %s93_s29, %s2782_s19  ;;  %p2788_p3 = scmp.lt.s32.totalorder %s2782_s19, %s2782_s19 }
  0x61   :  { %p2789_p4 = por %p2788_p3, %p2787_p2 }
  0x63   :  { %p2790_p5 = pnand %p2789_p4, %p2783_p1 }
  0x65   :  { %2793 = shalt.err (!%p2790_p5)
}
  0x66   :  { %98 = dma.hbm_to_vmem [thread:$0]  %s3196_s8, 1024, %s93_s29, [#allocation14], %s2899_s22, %s2899_s22, %s2900_s27  }
  0x67   :  { %2882 = dma.done.wait [#allocation5], 128  }
  0x68   :  { %2883 = vsyncadd [#allocation5], 4294967168 }
  0x69   :  { %2884 = dma.done.wait [#allocation8], 8704  }
  0x6a   :  { %2885 = vsyncadd [#allocation8], 4294958592 }
  0x6b   :  { %2886 = dma.done.wait [#allocation11], 9216  }
  0x6c   :  { %2887 = vsyncadd [#allocation11], 4294958080 }
  0x6d   :  { %2888 = dma.done.wait [#allocation14], 1024  }
  0x6e   :  { %2889 = vsyncadd [#allocation14], 4294966272  ;;  %v2904_v0 = vmov 0   ;;  %v125_v1 = vld [vmem:[#allocation7] sm:$0xff]  ;;  %vm153_vm0 = vcmask 1043456   ;;  %v126_v2 = vld [vmem:[#allocation7 + $0x8] sm:$0xff]  ;;  %v477_v36 = vlaneseq }
  0x6f   :  { %210 = vmatprep.mubr.bf16.mxu0 %v2904_v0  ;;  %251 = vmatprep.mubr.bf16.mxu1 %v2904_v0  ;;  %v2092_v3 = vcombine.high %v125_v1, %v125_v1  ;;  %v2094_v4 = vcombine.high %v126_v2, %v126_v2  ;;  %v2091_v5 = vcombine.low %v125_v1, %v125_v1  ;;  %v127_v7 = vld [vmem:[#allocation7 + $0x10] sm:$0xff]  ;;  %v128_v8 = vld [vmem:[#allocation7 + $0x18] sm:$0xff]  ;;  %vm149_vm1 = vcmask 64512   ;;  %v2509_v16 = vld [vmem:[#allocation9 + $0x40] sm:$0xff]   ;;  %s2909_s3 = smov [#allocation15]  }
  0x70   :  { %v2093_v6 = vcombine.low %v126_v2, %v126_v2  ;;  %v2096_v9 = vcombine.high %v127_v7, %v127_v7  ;;  %v2095_v10 = vcombine.low %v127_v7, %v127_v7  ;;  %v2098_v11 = vcombine.high %v128_v8, %v128_v8  ;;  %v124_v15 = vld [vmem:[%s3192_s4] sm:$0x1]  ;;  %v2511_v19 = vld [vmem:[#allocation9 + $0xc0] sm:$0xff]   ;;  %v2513_v22 = vld [vmem:[#allocation9 + $0x48] sm:$0xff]   ;;  %s2038_s16 = sshll.u32 %s2909_s3, 4  ;;  %s2039_s16 = int_to_ptr.vmem [resolvable:$true] %s2038_s16 }
  0x71   :  { %v2097_v12 = vcombine.low %v128_v8, %v128_v8  ;;  %2099 = vmatprep.subr.msk.bf16.mxu0 %vm153_vm0, %v2092_v3  ;;  %2101 = vmatprep.subr.msk.bf16.mxu1 %vm153_vm0, %v2094_v4  ;;  %v155_v13 = vsel %vm153_vm0, %v2091_v5, 0  ;;  %v2510_v20 = vld [vmem:[#allocation9] sm:$0xff]   ;;  %v2515_v23 = vld [vmem:[#allocation9 + $0xc8] sm:$0xff]   ;;  %v2517_v26 = vld [vmem:[#allocation9 + $0x50] sm:$0xff]   ;;  %v2905_v34 = vmov 1966171168  }
  0x72   :  { %v161_v14 = vsel %vm153_vm0, %v2093_v6, 0  ;;  %179 = vmatpush1.bf16.msra.mxu0 %v155_v13  ;;  %v167_v17 = vsel %vm153_vm0, %v2095_v10, 0  ;;  %v2512_v21 = vld [vmem:[#allocation9 + $0x80] sm:$0xff]   ;;  %v2514_v24 = vld [vmem:[#allocation9 + $0x8] sm:$0xff]   ;;  %v2519_v27 = vld [vmem:[#allocation9 + $0xd0] sm:$0xff]   ;;  %v475_v35 = vunpack.c.l.s4 %v2905_v34  ;;  %v3076_v42 = vshrl.u32 %v477_v36, 7 }
  0x73   :  { %220 = vmatpush1.bf16.msra.mxu1 %v161_v14  ;;  %2103 = vmatprep.subr.msk.bf16.mxu0 %vm153_vm0, %v2096_v9  ;;  %v173_v18 = vsel %vm153_vm0, %v2097_v12, 0  ;;  %v2516_v25 = vld [vmem:[#allocation9 + $0x88] sm:$0xff]   ;;  %v2518_v28 = vld [vmem:[#allocation9 + $0x10] sm:$0xff]   ;;  %v2521_v30 = vld [vmem:[#allocation9 + $0x58] sm:$0xff]   ;;  %vm1764_vm2 = vcmask 1041408   ;;  %vm2907_vm3 = vmmov 0  }
  0x74   :  { %2105 = vmatprep.subr.msk.bf16.mxu1 %vm153_vm0, %v2098_v11  ;;  %v2520_v29 = vld [vmem:[#allocation9 + $0x90] sm:$0xff]   ;;  %v2523_v31 = vld [vmem:[#allocation9 + $0xd8] sm:$0xff]   ;;  %v2525_v37 = vld [vmem:[#allocation9 + $0x60] sm:$0xff]   ;;  %v476_v41 = vunpack.c.0.s8 %v475_v35  ;;  %vm1793_vm4 = vcmask 1040384  }
  0x75   :  { %2100 = vmatmul.mubr.msk.bf16.vlgmr.msra.gmra.mrb[0].mxu0 %vm149_vm1, %v124_v15  ;;  %v2522_v32 = vld [vmem:[#allocation9 + $0x18] sm:$0xff]   ;;  %v2527_v38 = vld [vmem:[#allocation9 + $0xe0] sm:$0xff]   ;;  %v2529_v43 = vld [vmem:[#allocation9 + $0x68] sm:$0xff]  }
  0x76   :  { %2102 = vmatmul.mubr.msk.bf16.vlgmr.msra.gmra.mrb[0].mxu1 %vm149_vm1, %v124_v15  ;;  %261 = vmatpush1.bf16.msra.mxu0 %v167_v17  ;;  %v2524_v33 = vld [vmem:[#allocation9 + $0x98] sm:$0xff]   ;;  %v2526_v39 = vld [vmem:[#allocation9 + $0x20] sm:$0xff]   ;;  %v2531_v44 = vld [vmem:[#allocation9 + $0xe8] sm:$0xff]   ;;  %v3079_v47 = vsub.s32 %v476_v41, %v3076_v42 }
  0x77   :  { %302 = vmatpush1.bf16.msra.mxu1 %v173_v18  ;;  %292 = vmatprep.mubr.bf16.mxu0 %v2904_v0  ;;  %v2528_v40 = vld [vmem:[#allocation9 + $0xa0] sm:$0xff]   ;;  %v2530_v45 = vld [vmem:[#allocation9 + $0x28] sm:$0xff]   ;;  %v2533_v48 = vld [vmem:[#allocation9 + $0x70] sm:$0xff]  }
  0x78   :  { %2251 = vmatprep.subr.bf16.mxu0 %v2509_v16  ;;  %333 = vmatprep.mubr.bf16.mxu1 %v2904_v0  ;;  %v2532_v46 = vld [vmem:[#allocation9 + $0xa8] sm:$0xff]   ;;  %v2535_v49 = vld [vmem:[#allocation9 + $0xf0] sm:$0xff]   ;;  %v343_v51 = vld [vmem:[#allocation4] sm:$0xff] }
  0x79   :  { %2273 = vmatprep.subr.bf16.mxu1 %v2511_v19  ;;  %v2534_v50 = vld [vmem:[#allocation9 + $0x30] sm:$0xff]   ;;  %v480_v53 = vrot.slane %v343_v51, %v3079_v47  ;;  %v473_v54 = vcombine.high %v343_v51, %v343_v51  ;;  %v2537_v55 = vld [vmem:[#allocation9 + $0x78] sm:$0xff]   ;;  %v2541_v0 = vld [vmem:[#allocation9 + $0x140] sm:$0xff]  }
  0x7a   :  { %v2536_v52 = vld [vmem:[#allocation9 + $0xb0] sm:$0xff]   ;;  %v2539_v56 = vld [vmem:[#allocation9 + $0xf8] sm:$0xff]   ;;  %v2543_v2 = vld [vmem:[#allocation9 + $0x1c0] sm:$0xff]  }
  0x7b   :  { %v488_v57 = vcombine.high %v480_v53, %v480_v53  ;;  %v3083_v58 = vrot.slane %v473_v54, %v3079_v47  ;;  %v2538_v59 = vld [vmem:[#allocation9 + $0x38] sm:$0xff]   ;;  %v496_v62 = vrot.slane %v480_v53, %v3079_v47  ;;  %v2542_v3 = vld [vmem:[#allocation9 + $0x100] sm:$0xff]   ;;  %v2545_v7 = vld [vmem:[#allocation9 + $0x148] sm:$0xff]  }
  0x7c   :  { %v2540_v60 = vld [vmem:[#allocation9 + $0xb8] sm:$0xff]   ;;  %v2544_v6 = vld [vmem:[#allocation9 + $0x180] sm:$0xff]   ;;  %v2547_v8 = vld [vmem:[#allocation9 + $0x1c8] sm:$0xff]  }
  0x7d   :  { %2104 = vmatmul.mubr.msk.bf16.vlgmr.msra.gmra.mrb[4].mxu0 %vm149_vm1, %v124_v15  ;;  %v510_v61 = vrot.slane %v488_v57, %v3079_v47  ;;  %v489_v63 = vcombine.high %v3083_v58, %v3083_v58  ;;  %v518_v5 = vcombine.high %v496_v62, %v496_v62  ;;  %v2546_v9 = vld [vmem:[#allocation9 + $0x108] sm:$0xff]   ;;  %v2549_v12 = vld [vmem:[#allocation9 + $0x150] sm:$0xff]   ;;  %v2553_v16 = vld [vmem:[#allocation9 + $0x158] sm:$0xff]   ;;  %v503_v36 = vrot.slane %v3083_v58, %v3079_v47 }
  0x7e   :  { %2106 = vmatmul.mubr.msk.bf16.vlgmr.msra.gmra.mrb[4].mxu1 %vm149_vm1, %v124_v15  ;;  %2252 = vmatpush3.bf16.msra.mxu0 %v2510_v20  ;;  %v2548_v11 = vld [vmem:[#allocation9 + $0x188] sm:$0xff]   ;;  %v2551_v13 = vld [vmem:[#allocation9 + $0x1d0] sm:$0xff]   ;;  %v2555_v17 = vld [vmem:[#allocation9 + $0x1d8] sm:$0xff]  }
  0x7f   :  { %2274 = vmatpush3.bf16.msra.mxu1 %v2512_v21  ;;  %2253 = vmatprep.subr.bf16.mxu0 %v2513_v22  ;;  %v520_v1 = vcombine.high %v510_v61, %v510_v61  ;;  %v517_v4 = vrot.slane %v489_v63, %v3079_v47  ;;  %v2550_v14 = vld [vmem:[#allocation9 + $0x110] sm:$0xff]   ;;  %v2554_v18 = vld [vmem:[#allocation9 + $0x118] sm:$0xff]   ;;  %v2557_v20 = vld [vmem:[#allocation9 + $0x160] sm:$0xff]  }
  0x80   :  { %2275 = vmatprep.subr.bf16.mxu1 %v2515_v23  ;;  %946 = vmatprep.mubr.bf16.mxu0 %v510_v61  ;;  %v2552_v15 = vld [vmem:[#allocation9 + $0x190] sm:$0xff]   ;;  %v2556_v19 = vld [vmem:[#allocation9 + $0x198] sm:$0xff]   ;;  %v2559_v21 = vld [vmem:[#allocation9 + $0x1e0] sm:$0xff]  }
  0x81   :  { %986 = vmatprep.mubr.bf16.mxu1 %v520_v1  ;;  %v521_v10 = vcombine.high %v517_v4, %v517_v4  ;;  %v2558_v22 = vld [vmem:[#allocation9 + $0x120] sm:$0xff]   ;;  %v2570_v34 = vld [vmem:[#allocation9 + $0x138] sm:$0xff]   ;;  %v2582_v47 = vld [vmem:[#allocation10 + $0x50] sm:$0xff]  }
  0x82   :  { %2254 = vmatpush3.bf16.msra.mxu0 %v2514_v24  ;;  %v2560_v23 = vld [vmem:[#allocation9 + $0x1a0] sm:$0xff]   ;;  %v2561_v24 = vld [vmem:[#allocation9 + $0x168] sm:$0xff]   ;;  %v2573_v35 = vld [vmem:[#allocation9 + $0x1b8] sm:$0xff]  }
  0x83   :  { %2276 = vmatpush3.bf16.msra.mxu1 %v2516_v25  ;;  %2255 = vmatprep.subr.bf16.mxu0 %v2517_v26  ;;  %v2563_v25 = vld [vmem:[#allocation9 + $0x1e8] sm:$0xff]   ;;  %v2577_v41 = vld [vmem:[#allocation10 + $0x80] sm:$0xff]   ;;  %v2586_v51 = vld [vmem:[#allocation10 + $0x58] sm:$0xff]  }
  0x84   :  { %2277 = vmatprep.subr.bf16.mxu1 %v2519_v27  ;;  %v2562_v26 = vld [vmem:[#allocation9 + $0x128] sm:$0xff]   ;;  %v2588_v53 = vld [vmem:[#allocation10 + $0x18] sm:$0xff]   ;;  %v2592_v57 = vld [vmem:[#allocation10 + $0x20] sm:$0xff]  }
  0x85   :  { %v2564_v27 = vld [vmem:[#allocation9 + $0x1a8] sm:$0xff]   ;;  %v2589_v54 = vld [vmem:[#allocation10 + $0x98] sm:$0xff]   ;;  %v2593_v58 = vld [vmem:[#allocation10 + $0xa0] sm:$0xff]  }
  0x86   :  { %2256 = vmatpush3.bf16.msra.mxu0 %v2518_v28  ;;  %v2565_v28 = vld [vmem:[#allocation9 + $0x170] sm:$0xff]   ;;  %v2596_v61 = vld [vmem:[#allocation10 + $0x28] sm:$0xff]  }
  0x87   :  { %2278 = vmatpush3.bf16.msra.mxu1 %v2520_v29  ;;  %2257 = vmatprep.subr.bf16.mxu0 %v2521_v30  ;;  %v2567_v29 = vld [vmem:[#allocation9 + $0x1f0] sm:$0xff]  }
  0x88   :  { %2279 = vmatprep.subr.bf16.mxu1 %v2523_v31  ;;  %v2566_v30 = vld [vmem:[#allocation9 + $0x130] sm:$0xff]  }
  0x89   :  { %v2568_v31 = vld [vmem:[#allocation9 + $0x1b0] sm:$0xff]  }
  0x8a   :  { %2258 = vmatpush3.bf16.msra.mxu0 %v2522_v32  ;;  %v2569_v32 = vld [vmem:[#allocation9 + $0x178] sm:$0xff]   ;;  %v2598_v63 = vld [vmem:[#allocation10 + $0x70] sm:$0xff]  }
  0x8b   :  { %2280 = vmatpush3.bf16.msra.mxu1 %v2524_v33  ;;  %2259 = vmatprep.subr.bf16.mxu0 %v2525_v37  ;;  %v2571_v33 = vld [vmem:[#allocation9 + $0x1f8] sm:$0xff]   ;;  %v2574_v37 = vld [vmem:[#allocation10 + $0x40] sm:$0xff]   ;;  %v2600_v1 = vld [vmem:[#allocation10 + $0x30] sm:$0xff]  }
  0x8c   :  { %2281 = vmatprep.subr.bf16.mxu1 %v2527_v38  ;;  %v2575_v38 = vld [vmem:[#allocation10 + $0xc0] sm:$0xff]  }
  0x8e   :  { %2260 = vmatpush3.bf16.msra.mxu0 %v2526_v39  ;;  %v2576_v39 = vld [vmem:[#allocation10] sm:$0xff]  }
  0x8f   :  { %2282 = vmatpush3.bf16.msra.mxu1 %v2528_v40  ;;  %2261 = vmatprep.subr.bf16.mxu0 %v2529_v43  ;;  %v519_v40 = vcombine.high %v503_v36, %v503_v36  ;;  %v2578_v43 = vld [vmem:[#allocation10 + $0x48] sm:$0xff]  }
  0x90   :  { %2283 = vmatprep.subr.bf16.mxu1 %v2531_v44  ;;  %v2579_v44 = vld [vmem:[#allocation10 + $0xc8] sm:$0xff]  }
  0x92   :  { %2262 = vmatpush3.bf16.msra.mxu0 %v2530_v45  ;;  %v2580_v45 = vld [vmem:[#allocation10 + $0x8] sm:$0xff]  }
  0x93   :  { %2284 = vmatpush3.bf16.msra.mxu1 %v2532_v46  ;;  %2263 = vmatprep.subr.bf16.mxu0 %v2533_v48  ;;  %v2581_v46 = vld [vmem:[#allocation10 + $0x88] sm:$0xff]   ;;  %v2583_v48 = vld [vmem:[#allocation10 + $0xd0] sm:$0xff]  }
  0x94   :  { %2285 = vmatprep.subr.bf16.mxu1 %v2535_v49  ;;  %v2584_v49 = vld [vmem:[#allocation10 + $0x10] sm:$0xff]  }
  0x96   :  { %2264 = vmatpush3.bf16.msra.mxu0 %v2534_v50  ;;  %v2585_v50 = vld [vmem:[#allocation10 + $0x90] sm:$0xff]  }
  0x97   :  { %2286 = vmatpush3.bf16.msra.mxu1 %v2536_v52  ;;  %2265 = vmatprep.subr.bf16.mxu0 %v2537_v55  ;;  %v2587_v52 = vld [vmem:[#allocation10 + $0xd8] sm:$0xff]   ;;  %v2590_v55 = vld [vmem:[#allocation10 + $0x60] sm:$0xff]  }
  0x98   :  { %2287 = vmatprep.subr.bf16.mxu1 %v2539_v56  ;;  %v2591_v56 = vld [vmem:[#allocation10 + $0xe0] sm:$0xff]  }
  0x9a   :  { %2266 = vmatpush3.bf16.msra.mxu0 %v2538_v59  ;;  %v2594_v59 = vld [vmem:[#allocation10 + $0x68] sm:$0xff]  }
  0x9b   :  { %2288 = vmatpush3.bf16.msra.mxu1 %v2540_v60  ;;  %2295 = vmatprep.subr.bf16.mxu0 %v2541_v0  ;;  %v2595_v60 = vld [vmem:[#allocation10 + $0xe8] sm:$0xff]   ;;  %v2599_v0 = vld [vmem:[#allocation10 + $0xf0] sm:$0xff]  }
  0x9c   :  { %2317 = vmatprep.subr.bf16.mxu1 %v2543_v2  ;;  %v2601_v2 = vld [vmem:[#allocation10 + $0xb0] sm:$0xff]  }
  0x9d   :  { %947 = vmatmul.mubr.bf16.vlgmr.msra.gmra.mrb[8].mxu0 %v496_v62  ;;  %v2597_v62 = vld [vmem:[#allocation10 + $0xa8] sm:$0xff]  }
  0x9e   :  { %987 = vmatmul.mubr.bf16.vlgmr.msra.gmra.mrb[8].mxu1 %v518_v5  ;;  %2296 = vmatpush3.bf16.msra.mxu0 %v2542_v3  ;;  %v2602_v3 = vld [vmem:[#allocation10 + $0x78] sm:$0xff]  }
  0x9f   :  { %2318 = vmatpush3.bf16.msra.mxu1 %v2544_v6  ;;  %2297 = vmatprep.subr.bf16.mxu0 %v2545_v7  ;;  %v2604_v5 = vld [vmem:[#allocation10 + $0x38] sm:$0xff]   ;;  %v2606_v7 = vld [vmem:[#allocation10 + $0x140] sm:$0xff]  }
  0xa0   :  { %2319 = vmatprep.subr.bf16.mxu1 %v2547_v8  ;;  %1026 = vmatprep.mubr.bf16.mxu0 %v517_v4  ;;  %v2603_v4 = vld [vmem:[#allocation10 + $0xf8] sm:$0xff]   ;;  %v2607_v8 = vld [vmem:[#allocation10 + $0x1c0] sm:$0xff]  }
  0xa1   :  { %1066 = vmatprep.mubr.bf16.mxu1 %v521_v10  ;;  %v2605_v6 = vld [vmem:[#allocation10 + $0xb8] sm:$0xff]  }
  0xa2   :  { %2298 = vmatpush3.bf16.msra.mxu0 %v2546_v9  ;;  %v2906_v9 = vmov 0.0  }
  0xa3   :  { %2320 = vmatpush3.bf16.msra.mxu1 %v2548_v11  ;;  %2299 = vmatprep.subr.bf16.mxu0 %v2549_v12  ;;  %122 = vst [vmem:[#allocation2] sm:$0x3] %v2906_v9  ;;  %123 = vst [vmem:[#allocation3] sm:$0x3] %v2906_v9 }
  0xa4   :  { %2321 = vmatprep.subr.bf16.mxu1 %v2551_v13 }
  0xa6   :  { %2300 = vmatpush3.bf16.msra.mxu0 %v2550_v14 }
  0xa7   :  { %2322 = vmatpush3.bf16.msra.mxu1 %v2552_v15  ;;  %2301 = vmatprep.subr.bf16.mxu0 %v2553_v16 }
  0xa8   :  { %2323 = vmatprep.subr.bf16.mxu1 %v2555_v17 }
  0xaa   :  { %2302 = vmatpush3.bf16.msra.mxu0 %v2554_v18 }
  0xab   :  { %2324 = vmatpush3.bf16.msra.mxu1 %v2556_v19  ;;  %2303 = vmatprep.subr.bf16.mxu0 %v2557_v20  ;;  %v2608_v19 = vld [vmem:[#allocation10 + $0x100] sm:$0xff]  }
  0xac   :  { %2325 = vmatprep.subr.bf16.mxu1 %v2559_v21  ;;  %v2609_v20 = vld [vmem:[#allocation10 + $0x180] sm:$0xff]  }
  0xae   :  { %2304 = vmatpush3.bf16.msra.mxu0 %v2558_v22 }
  0xaf   :  { %2326 = vmatpush3.bf16.msra.mxu1 %v2560_v23  ;;  %2305 = vmatprep.subr.bf16.mxu0 %v2561_v24  ;;  %v2610_v24 = vld [vmem:[#allocation10 + $0x148] sm:$0xff]  }
  0xb0   :  { %2327 = vmatprep.subr.bf16.mxu1 %v2563_v25  ;;  %v2611_v25 = vld [vmem:[#allocation10 + $0x1c8] sm:$0xff]  }
  0xb2   :  { %2306 = vmatpush3.bf16.msra.mxu0 %v2562_v26  ;;  %v2612_v26 = vld [vmem:[#allocation10 + $0x108] sm:$0xff]  }
  0xb3   :  { %2328 = vmatpush3.bf16.msra.mxu1 %v2564_v27  ;;  %2307 = vmatprep.subr.bf16.mxu0 %v2565_v28  ;;  %v2613_v27 = vld [vmem:[#allocation10 + $0x188] sm:$0xff]   ;;  %v2614_v28 = vld [vmem:[#allocation10 + $0x150] sm:$0xff]  }
  0xb4   :  { %2329 = vmatprep.subr.bf16.mxu1 %v2567_v29  ;;  %v2615_v29 = vld [vmem:[#allocation10 + $0x1d0] sm:$0xff]  }
  0xb6   :  { %2308 = vmatpush3.bf16.msra.mxu0 %v2566_v30 }
  0xb7   :  { %2330 = vmatpush3.bf16.msra.mxu1 %v2568_v31  ;;  %2309 = vmatprep.subr.bf16.mxu0 %v2569_v32 }
  0xb8   :  { %2331 = vmatprep.subr.bf16.mxu1 %v2571_v33 }
  0xba   :  { %2310 = vmatpush3.bf16.msra.mxu0 %v2570_v34  ;;  %v2616_v34 = vld [vmem:[#allocation10 + $0x110] sm:$0xff]  }
  0xbb   :  { %2332 = vmatpush3.bf16.msra.mxu1 %v2573_v35  ;;  %2339 = vmatprep.subr.bf16.mxu0 %v2574_v37  ;;  %v2617_v35 = vld [vmem:[#allocation10 + $0x190] sm:$0xff]  }
  0xbc   :  { %2361 = vmatprep.subr.bf16.mxu1 %v2575_v38 }
  0xbd   :  { %1027 = vmatmul.mubr.bf16.vlgmr.msra.gmra.mrb[12].mxu0 %v503_v36 }
  0xbe   :  { %1067 = vmatmul.mubr.bf16.vlgmr.msra.gmra.mrb[12].mxu1 %v519_v40  ;;  %2340 = vmatpush3.bf16.msra.mxu0 %v2576_v39  ;;  %v2618_v40 = vld [vmem:[#allocation10 + $0x158] sm:$0xff]  }
  0xbf   :  { %2362 = vmatpush3.bf16.msra.mxu1 %v2577_v41  ;;  %2341 = vmatprep.subr.bf16.mxu0 %v2578_v43  ;;  %v2619_v41 = vld [vmem:[#allocation10 + $0x1d8] sm:$0xff]  }
  0xc0   :  { %2363 = vmatprep.subr.bf16.mxu1 %v2579_v44 }
  0xc2   :  { %2342 = vmatpush3.bf16.msra.mxu0 %v2580_v45  ;;  %v2620_v45 = vld [vmem:[#allocation10 + $0x118] sm:$0xff]  }
  0xc3   :  { %2364 = vmatpush3.bf16.msra.mxu1 %v2581_v46  ;;  %2343 = vmatprep.subr.bf16.mxu0 %v2582_v47  ;;  %v2621_v46 = vld [vmem:[#allocation10 + $0x198] sm:$0xff]   ;;  %v2622_v47 = vld [vmem:[#allocation10 + $0x160] sm:$0xff]  }
  0xc4   :  { %2365 = vmatprep.subr.bf16.mxu1 %v2583_v48  ;;  %v2623_v48 = vld [vmem:[#allocation10 + $0x1e0] sm:$0xff]  }
  0xc6   :  { %2344 = vmatpush3.bf16.msra.mxu0 %v2584_v49  ;;  %v2624_v49 = vld [vmem:[#allocation10 + $0x120] sm:$0xff]  }
  0xc7   :  { %2366 = vmatpush3.bf16.msra.mxu1 %v2585_v50  ;;  %2345 = vmatprep.subr.bf16.mxu0 %v2586_v51  ;;  %v2625_v50 = vld [vmem:[#allocation10 + $0x1a0] sm:$0xff]   ;;  %v2626_v51 = vld [vmem:[#allocation10 + $0x168] sm:$0xff]  }
  0xc8   :  { %2367 = vmatprep.subr.bf16.mxu1 %v2587_v52  ;;  %v2627_v52 = vld [vmem:[#allocation10 + $0x1e8] sm:$0xff]  }
  0xca   :  { %2346 = vmatpush3.bf16.msra.mxu0 %v2588_v53  ;;  %v2628_v53 = vld [vmem:[#allocation10 + $0x128] sm:$0xff]  }
  0xcb   :  { %2368 = vmatpush3.bf16.msra.mxu1 %v2589_v54  ;;  %2347 = vmatprep.subr.bf16.mxu0 %v2590_v55  ;;  %v2629_v54 = vld [vmem:[#allocation10 + $0x1a8] sm:$0xff]   ;;  %v2630_v55 = vld [vmem:[#allocation10 + $0x170] sm:$0xff]  }
  0xcc   :  { %2369 = vmatprep.subr.bf16.mxu1 %v2591_v56  ;;  %v2631_v56 = vld [vmem:[#allocation10 + $0x1f0] sm:$0xff]  }
  0xce   :  { %2348 = vmatpush3.bf16.msra.mxu0 %v2592_v57  ;;  %v2632_v57 = vld [vmem:[#allocation10 + $0x130] sm:$0xff]  }
  0xcf   :  { %2370 = vmatpush3.bf16.msra.mxu1 %v2593_v58  ;;  %2349 = vmatprep.subr.bf16.mxu0 %v2594_v59  ;;  %v2633_v58 = vld [vmem:[#allocation10 + $0x1b0] sm:$0xff]   ;;  %v2634_v59 = vld [vmem:[#allocation10 + $0x178] sm:$0xff]  }
  0xd0   :  { %2371 = vmatprep.subr.bf16.mxu1 %v2595_v60  ;;  %v2635_v60 = vld [vmem:[#allocation10 + $0x1f8] sm:$0xff]  }
  0xd2   :  { %2350 = vmatpush3.bf16.msra.mxu0 %v2596_v61  ;;  %v2636_v61 = vld [vmem:[#allocation10 + $0x138] sm:$0xff]  }
  0xd3   :  { %2372 = vmatpush3.bf16.msra.mxu1 %v2597_v62  ;;  %2351 = vmatprep.subr.bf16.mxu0 %v2598_v63  ;;  %v2637_v62 = vld [vmem:[#allocation10 + $0x1b8] sm:$0xff]  }
  0xd4   :  { %2373 = vmatprep.subr.bf16.mxu1 %v2599_v0 }
  0xd6   :  { %2352 = vmatpush3.bf16.msra.mxu0 %v2600_v1 }
  0xd7   :  { %2374 = vmatpush3.bf16.msra.mxu1 %v2601_v2  ;;  %2353 = vmatprep.subr.bf16.mxu0 %v2602_v3 }
  0xd8   :  { %2375 = vmatprep.subr.bf16.mxu1 %v2603_v4 }
  0xda   :  { %2354 = vmatpush3.bf16.msra.mxu0 %v2604_v5 }
  0xdb   :  { %2376 = vmatpush3.bf16.msra.mxu1 %v2605_v6  ;;  %2383 = vmatprep.subr.bf16.mxu0 %v2606_v7 }
  0xdc   :  { %2405 = vmatprep.subr.bf16.mxu1 %v2607_v8 }
 0x148   :  { %v212_v10 = vpop.f32.mrb[0].mxu0 }
 0x149   :  { %v253_v11 = vpop.f32.mrb[0].mxu1  ;;  %v214_v13 = vpop.f32.mrb[1].mxu0  ;;  %v1077_v21 = vpack.c.bf16 %v212_v10, %v212_v10 }
 0x14a   :  { %v1079_v12 = vpack.c.bf16 %v253_v11, %v253_v11  ;;  %v255_v14 = vpop.f32.mrb[1].mxu1  ;;  %v1078_v15 = vpack.c.bf16 %v214_v13, %v214_v13  ;;  %v216_v17 = vpop.f32.mrb[2].mxu0 }
 0x14b   :  { %v1080_v16 = vpack.c.bf16 %v255_v14, %v255_v14  ;;  %v257_v18 = vpop.f32.mrb[2].mxu1  ;;  %v217_v22 = vpop.f32.mrb[3].mxu0 }
 0x14c   :  { %v258_v23 = vpop.f32.mrb[3].mxu1  ;;  %1629 = vmatprep.mubr.bf16.mxu0 %v1078_v15 }
 0x14d   :  { %1669 = vmatprep.mubr.bf16.mxu1 %v1080_v16  ;;  %1630 = vmatmul.mubr.bf16.vlgmr.msra.gmra.mrb[16].mxu0 %v1077_v21 }
 0x14e   :  { %1670 = vmatmul.mubr.bf16.vlgmr.msra.gmra.mrb[16].mxu1 %v1079_v12  ;;  %2384 = vmatpush3.bf16.msra.mxu0 %v2608_v19 }
 0x14f   :  { %2406 = vmatpush3.bf16.msra.mxu1 %v2609_v20  ;;  %2385 = vmatprep.subr.bf16.mxu0 %v2610_v24  ;;  %v342_v24 = vld [vmem:[#allocation2] sm:$0x3] }
 0x150   :  { %2407 = vmatprep.subr.bf16.mxu1 %v2611_v25  ;;  %v3094_v30 = vpop.f32.mrb[4].mxu0 }
 0x151   :  { %v3096_v31 = vpop.f32.mrb[4].mxu1  ;;  %v296_v32 = vpop.f32.mrb[5].mxu0  ;;  %v1081_v0 = vpack.c.bf16 %v3094_v30, %v3094_v30  ;;  %v2638_v30 = vld [vmem:[#allocation12] sm:$0xff]  }
 0x152   :  { %v337_v33 = vpop.f32.mrb[5].mxu1  ;;  %2386 = vmatpush3.bf16.msra.mxu0 %v2612_v26  ;;  %v1082_v36 = vpack.c.bf16 %v296_v32, %v296_v32  ;;  %v298_v37 = vpop.f32.mrb[6].mxu0  ;;  %v1083_v63 = vpack.c.bf16 %v3096_v31, %v3096_v31  ;;  %v2639_v31 = vld [vmem:[#allocation12 + $0x8] sm:$0xff]   ;;  %v2640_v32 = vld [vmem:[#allocation12 + $0x10] sm:$0xff]  }
 0x153   :  { %2408 = vmatpush3.bf16.msra.mxu1 %v2613_v27  ;;  %v1084_v38 = vpack.c.bf16 %v337_v33, %v337_v33  ;;  %v339_v39 = vpop.f32.mrb[6].mxu1  ;;  %2387 = vmatprep.subr.bf16.mxu0 %v2614_v28  ;;  %v299_v43 = vpop.f32.mrb[7].mxu0  ;;  %v2641_v33 = vld [vmem:[#allocation12 + $0x18] sm:$0xff]  }
 0x154   :  { %2409 = vmatprep.subr.bf16.mxu1 %v2615_v29  ;;  %v340_v44 = vpop.f32.mrb[7].mxu1  ;;  %1709 = vmatprep.mubr.bf16.mxu0 %v1082_v36 }
 0x155   :  { %1749 = vmatprep.mubr.bf16.mxu1 %v1084_v38 }
 0x156   :  { %2388 = vmatpush3.bf16.msra.mxu0 %v2616_v34 }
 0x157   :  { %2410 = vmatpush3.bf16.msra.mxu1 %v2617_v35  ;;  %2389 = vmatprep.subr.bf16.mxu0 %v2618_v40 }
 0x158   :  { %2411 = vmatprep.subr.bf16.mxu1 %v2619_v41 }
 0x15a   :  { %2390 = vmatpush3.bf16.msra.mxu0 %v2620_v45 }
 0x15b   :  { %2412 = vmatpush3.bf16.msra.mxu1 %v2621_v46  ;;  %2391 = vmatprep.subr.bf16.mxu0 %v2622_v47 }
 0x15c   :  { %2413 = vmatprep.subr.bf16.mxu1 %v2623_v48 }
 0x15e   :  { %2392 = vmatpush3.bf16.msra.mxu0 %v2624_v49 }
 0x15f   :  { %2414 = vmatpush3.bf16.msra.mxu1 %v2625_v50  ;;  %2393 = vmatprep.subr.bf16.mxu0 %v2626_v51 }
 0x160   :  { %2415 = vmatprep.subr.bf16.mxu1 %v2627_v52 }
 0x162   :  { %2394 = vmatpush3.bf16.msra.mxu0 %v2628_v53 }
 0x163   :  { %2416 = vmatpush3.bf16.msra.mxu1 %v2629_v54  ;;  %2395 = vmatprep.subr.bf16.mxu0 %v2630_v55 }
 0x164   :  { %2417 = vmatprep.subr.bf16.mxu1 %v2631_v56 }
 0x166   :  { %2396 = vmatpush3.bf16.msra.mxu0 %v2632_v57 }
 0x167   :  { %2418 = vmatpush3.bf16.msra.mxu1 %v2633_v58  ;;  %2397 = vmatprep.subr.bf16.mxu0 %v2634_v59 }
 0x168   :  { %2419 = vmatprep.subr.bf16.mxu1 %v2635_v60 }
 0x16a   :  { %2398 = vmatpush3.bf16.msra.mxu0 %v2636_v61  ;;  %v1076_v61 = vld [vmem:[#allocation3] sm:$0x3] }
 0x16b   :  { %2420 = vmatpush3.bf16.msra.mxu1 %v2637_v62  ;;  %2445 = vmatprep.subr.bf16.mxu0 %v2906_v9 }
 0x16c   :  { %2465 = vmatprep.subr.bf16.mxu1 %v2906_v9 }
 0x16d   :  { %1710 = vmatmul.mubr.bf16.vlgmr.msra.gmra.mrb[20].mxu0 %v1081_v0 }
 0x16e   :  { %1750 = vmatmul.mubr.bf16.vlgmr.msra.gmra.mrb[20].mxu1 %v1083_v63  ;;  %2446 = vmatpush3.bf16.msra.mxu0 %v2638_v30 }
 0x16f   :  { %2447 = vmatprep.subr.bf16.mxu0 %v2906_v9  ;;  %2461 = vmatprep.mubr.msk.bf16.mxu0 %vm2907_vm3, %v2906_v9 }
 0x170   :  { %v2267_v1 = vpop.f32.mrb[8].mxu0  ;;  %2481 = vmatprep.mubr.msk.bf16.mxu1 %vm2907_vm3, %v2906_v9 }
 0x171   :  { %v2289_v2 = vpop.f32.mrb[8].mxu1  ;;  %v2268_v3 = vpop.f32.mrb[9].mxu0 }
 0x172   :  { %v2290_v4 = vpop.f32.mrb[9].mxu1  ;;  %v2269_v5 = vadd.f32 %v2268_v3, %v2267_v1  ;;  %v2270_v6 = vpop.f32.mrb[10].mxu0  ;;  %2448 = vmatpush3.bf16.msra.mxu0 %v2639_v31  ;;  %v2642_v3 = vld [vmem:[#allocation12 + $0x20] sm:$0xff]  }
 0x173   :  { %v2291_v7 = vadd.f32 %v2290_v4, %v2289_v2  ;;  %v2292_v8 = vpop.f32.mrb[10].mxu1  ;;  %v2271_v10 = vpop.f32.mrb[11].mxu0  ;;  %2449 = vmatprep.subr.bf16.mxu0 %v2906_v9  ;;  %v2643_v4 = vld [vmem:[#allocation12 + $0x28] sm:$0xff]   ;;  %v2645_v6 = vld [vmem:[#allocation12 + $0x38] sm:$0xff]  }
 0x174   :  { %v2293_v11 = vpop.f32.mrb[11].mxu1  ;;  %v2647_v8 = vld [vmem:[#allocation13 + $0x8] sm:$0xff]   ;;  %v2648_v10 = vld [vmem:[#allocation13 + $0x10] sm:$0xff]  }
 0x175   :  { %v989_v12 = vadd.f32 %v2291_v7, %v2269_v5  ;;  %v2644_v5 = vld [vmem:[#allocation12 + $0x30] sm:$0xff]   ;;  %v2646_v7 = vld [vmem:[#allocation13] sm:$0xff]   ;;  %v2649_v11 = vld [vmem:[#allocation13 + $0x18] sm:$0xff]  }
 0x176   :  { %2450 = vmatpush3.bf16.msra.mxu0 %v2640_v32  ;;  %2466 = vmatpush3.bf16.msra.mxu1 %v2646_v7  ;;  %v1788_v32 = vld [vmem:[%s3194_s6] sm:$0xff] }
 0x177   :  { %2451 = vmatprep.subr.bf16.mxu0 %v2906_v9  ;;  %2467 = vmatprep.subr.bf16.mxu1 %v2906_v9 }
 0x17a   :  { %2452 = vmatpush3.bf16.msra.mxu0 %v2641_v33  ;;  %2468 = vmatpush3.bf16.msra.mxu1 %v2647_v8  ;;  %v1907_v33 = vsub.s32 1, %v3076_v42 }
 0x17b   :  { %2453 = vmatprep.subr.bf16.mxu0 %v2906_v9  ;;  %2469 = vmatprep.subr.bf16.mxu1 %v2906_v9 }
 0x17e   :  { %2454 = vmatpush3.bf16.msra.mxu0 %v2642_v3  ;;  %2470 = vmatpush3.bf16.msra.mxu1 %v2648_v10 }
 0x17f   :  { %2455 = vmatprep.subr.bf16.mxu0 %v2906_v9  ;;  %2471 = vmatprep.subr.bf16.mxu1 %v2906_v9 }
 0x182   :  { %2456 = vmatpush3.bf16.msra.mxu0 %v2643_v4  ;;  %2472 = vmatpush3.bf16.msra.mxu1 %v2649_v11 }
 0x183   :  { %2457 = vmatprep.subr.bf16.mxu0 %v2906_v9  ;;  %2473 = vmatprep.subr.bf16.mxu1 %v2906_v9 }
 0x186   :  { %2458 = vmatpush3.bf16.msra.mxu0 %v2644_v5 }
 0x187   :  { %2459 = vmatprep.subr.bf16.mxu0 %v2906_v9 }
 0x18a   :  { %2460 = vmatpush3.bf16.msra.mxu0 %v2645_v6 }
 0x190   :  { %v2311_v13 = vpop.f32.mrb[12].mxu0 }
 0x191   :  { %v2333_v14 = vpop.f32.mrb[12].mxu1  ;;  %v2312_v15 = vpop.f32.mrb[13].mxu0 }
 0x192   :  { %v2334_v16 = vpop.f32.mrb[13].mxu1  ;;  %v2313_v17 = vadd.f32 %v2312_v15, %v2311_v13  ;;  %v2314_v19 = vpop.f32.mrb[14].mxu0  ;;  %v2651_v13 = vld [vmem:[#allocation13 + $0x28] sm:$0xff]  }
 0x193   :  { %v2335_v18 = vadd.f32 %v2334_v16, %v2333_v14  ;;  %v2336_v20 = vpop.f32.mrb[14].mxu1  ;;  %v2315_v21 = vpop.f32.mrb[15].mxu0 }
 0x194   :  { %v2337_v22 = vpop.f32.mrb[15].mxu1  ;;  %v1029_v23 = vadd.f32 %v2313_v17, %v989_v12  ;;  %v2650_v12 = vld [vmem:[#allocation13 + $0x20] sm:$0xff]   ;;  %v2652_v21 = vld [vmem:[#allocation13 + $0x30] sm:$0xff]  }
 0x195   :  { %2474 = vmatpush3.bf16.msra.mxu1 %v2650_v12  ;;  %v2653_v22 = vld [vmem:[#allocation13 + $0x38] sm:$0xff]  }
 0x196   :  { %v1069_v25 = vadd.f32 %v2335_v18, %v1029_v23  ;;  %2475 = vmatprep.subr.bf16.mxu1 %v2906_v9  ;;  %v1779_v23 = vld [vmem:[%s3193_s5] sm:$0xf]  ;;  %s2908_s5 = smov [#allocation16]  }
 0x197   :  { %s2048_s6 = sshll.u32 %s2908_s5, 4  ;;  %s2049_s6 = int_to_ptr.vmem [resolvable:$true] %s2048_s6 }
 0x198   :  { %v1074_v26 = vadd.f32 %v1069_v25, %v342_v24  ;;  %v1780_v24 = vsel %vm153_vm0, %v1779_v23, 0.0  ;;  %s2794_s23 = scalar_lea.vmem %s2049_s6, 32  ;;  %p2799_p7 = scmp.lt.s32.totalorder %s2049_s6, %s2049_s6 }
 0x199   :  { %2476 = vmatpush3.bf16.msra.mxu1 %v2651_v13  ;;  %v1781_v25 = vrot.slane %v1780_v24, 4  ;;  %p2795_p6 = scmp.ne.s32.totalorder %s2049_s6, %s2794_s23  ;;  %p2800_p8 = scmp.lt.s32.totalorder %s2794_s23, %s2794_s23 }
 0x19a   :  { %1075 = vst [vmem:[#allocation2] sm:$0x3] %v1074_v26  ;;  %2477 = vmatprep.subr.bf16.mxu1 %v2906_v9 }
 0x19b   :  { %v1782_v26 = vadd.f32 %v1781_v25, %v1780_v24  ;;  %p2801_p9 = por %p2800_p8, %p2799_p7 }
 0x19d   :  { %2478 = vmatpush3.bf16.msra.mxu1 %v2652_v21  ;;  %p2802_p10 = pnand %p2801_p9, %p2795_p6 }
 0x19e   :  { %2479 = vmatprep.subr.bf16.mxu1 %v2906_v9  ;;  %v1902_v9 = vsub.s32 0, %v3076_v42 }
 0x1a1   :  { %v1762_v27 = vld [vmem:[#allocation2] sm:$0x3]  ;;  %2480 = vmatpush3.bf16.msra.mxu1 %v2653_v22 }
 0x1a2   :  { %v1763_v28 = vmul.f32 %v1762_v27, %v1762_v27 }
 0x1a4   :  { %v1765_v29 = vsel %vm1764_vm2, %v1763_v28, 0.0 }
 0x1a5   :  { %1766 = vadd.xlane.f32.xlu0 %v1765_v29 }
 0x220   :  { %v2355_v34 = vpop.f32.mrb[16].mxu0 }
 0x221   :  { %v2377_v35 = vpop.f32.mrb[16].mxu1  ;;  %v2356_v36 = vpop.f32.mrb[17].mxu0 }
 0x222   :  { %v2378_v37 = vpop.f32.mrb[17].mxu1  ;;  %v2357_v38 = vadd.f32 %v2356_v36, %v2355_v34  ;;  %v2358_v40 = vpop.f32.mrb[18].mxu0 }
 0x223   :  { %v2379_v39 = vadd.f32 %v2378_v37, %v2377_v35  ;;  %v2380_v41 = vpop.f32.mrb[18].mxu1  ;;  %v2359_v43 = vpop.f32.mrb[19].mxu0 }
 0x224   :  { %v2381_v44 = vpop.f32.mrb[19].mxu1 }
 0x225   :  { %v1672_v45 = vadd.f32 %v2379_v39, %v2357_v38 }
 0x232   :  { %v1767_v46 = vpop.xlane.xlu0 %1766 }
 0x233   :  { %v1768_v47 = vadd.f32 1e-12, %v1767_v46 }
 0x235   :  { %2654 = vrsqrt.f32 %v1768_v47 }
 0x23f   :  { %v2655_v48 = vpop.eup %2654 }
 0x240   :  { %v3109_v49 = vmul.f32 %v2655_v48, %v1762_v27  ;;  %v2399_v50 = vpop.f32.mrb[20].mxu0  ;;  %v1783_v27 = vrot.slane %v1782_v26, 2 }
 0x241   :  { %v2421_v51 = vpop.f32.mrb[20].mxu1  ;;  %v2400_v52 = vpop.f32.mrb[21].mxu0 }
 0x242   :  { %v2422_v53 = vpop.f32.mrb[21].mxu1  ;;  %2028 = vst [vmem:[#allocation15] sm:$0x3] %v3109_v49  ;;  %v2401_v54 = vadd.f32 %v2400_v52, %v2399_v50  ;;  %v2402_v56 = vpop.f32.mrb[22].mxu0  ;;  %v1791_v18 = vrot.slane %v3109_v49, 7  ;;  %v1784_v28 = vadd.f32 %v1783_v27, %v1782_v26 }
 0x243   :  { %v2423_v55 = vadd.f32 %v2422_v53, %v2421_v51  ;;  %v2424_v57 = vpop.f32.mrb[22].mxu1  ;;  %v2403_v58 = vpop.f32.mrb[23].mxu0 }
 0x244   :  { %v2425_v59 = vpop.f32.mrb[23].mxu1  ;;  %v1712_v60 = vadd.f32 %v2401_v54, %v1672_v45  ;;  %v1785_v29 = vrot.slane %v1784_v28, 1 }
 0x246   :  { %v1752_v62 = vadd.f32 %v2423_v55, %v1712_v60  ;;  %v1786_v30 = vadd.f32 %v1785_v29, %v1784_v28 }
 0x248   :  { %v1757_v63 = vadd.f32 %v1752_v62, %v1076_v61  ;;  %v1787_v31 = vmul.f32 0.25, %v1786_v30 }
 0x24a   :  { %1758 = vst [vmem:[#allocation3] sm:$0x3] %v1757_v63  ;;  %v1789_v34 = vadd.f32 %v1788_v32, %v1787_v31 }
 0x251   :  { %v1771_v0 = vld [vmem:[#allocation3] sm:$0x3] }
 0x252   :  { %v1772_v1 = vmul.f32 %v1771_v0, %v1771_v0 }
 0x254   :  { %v1773_v2 = vsel %vm1764_vm2, %v1772_v1, 0.0 }
 0x255   :  { %1774 = vadd.xlane.f32.xlu0 %v1773_v2 }
 0x2e2   :  { %v1775_v14 = vpop.xlane.xlu0 %1774 }
 0x2e3   :  { %v1776_v15 = vadd.f32 1e-12, %v1775_v14 }
 0x2e5   :  { %2656 = vrsqrt.f32 %v1776_v15 }
 0x2ef   :  { %v2657_v16 = vpop.eup %2656 }
 0x2f0   :  { %v1778_v17 = vmul.f32 %v2657_v16, %v1771_v0 }
 0x2f2   :  { %2029 = vst [vmem:[#allocation16] sm:$0x3] %v1778_v17  ;;  %v1794_v19 = vsel %vm1793_vm4, %v1778_v17, %v1791_v18 }
 0x2f3   :  { %v1795_v20 = vpack.c.bf16 %v1794_v19, %v1794_v19 }
 0x2f5   :  { %2462 = vmatmul.mubr.bf16.vlgmr.msra.gmra.mrb[24].mxu0 %v1795_v20 }
 0x3c8   :  { %v1894_v35 = vpop.f32.mrb[24].mxu0 }
 0x3c9   :  { %v1903_v36 = vrot.slane %v1894_v35, %v1902_v9  ;;  %v1908_v37 = vrot.slane %v1894_v35, %v1907_v33  ;;  %v2463_v38 = vpop.f32.mrb[25].mxu0 }
 0x3ca   :  { %v1897_v39 = vpop.f32.mrb[26].mxu0 }
 0x3cb   :  { %v1904_v40 = vadd.f32 %v1903_v36, %v1789_v34  ;;  %v1909_v41 = vadd.f32 %v1908_v37, %v1789_v34  ;;  %v2464_v43 = vpop.f32.mrb[27].mxu0 }
 0x3cd   :  { %v1910_v44 = vpack.c.bf16 %v1909_v41, %v1904_v40 }
 0x3cf   :  { %2482 = vmatmul.mubr.bf16.vlgmr.msra.gmra.mrb[24].mxu1 %v1910_v44 }
 0x4a2   :  { %v2009_v45 = vpop.f32.mrb[24].mxu1 }
 0x4a3   :  { %v2483_v46 = vpop.f32.mrb[25].mxu1  ;;  %v2016_v47 = vmul.f32 %v2009_v45, %v2009_v45 }
 0x4a4   :  { %v3135_v48 = vpop.f32.mrb[26].mxu1 }
 0x4a5   :  { %2018 = vadd.xlane.f32.xlu1 %v2016_v47  ;;  %v2484_v49 = vpop.f32.mrb[27].mxu1  ;;  %v2017_v42 = vmul.f32 %v3135_v48, %v3135_v48 }
 0x4a9   :  { %2020 = vadd.xlane.f32.xlu1 %v2017_v42 }
 0x4aa   :  { %2805 = shalt.err (!%p2802_p10)
}
 0x4ab   :  { %s2806_s2 = scalar_lea.hbm %s3198_s10, 32 }
 0x4ac   :  { %p2807_p11 = scmp.ne.s32.totalorder %s3198_s10, %s2806_s2  ;;  %p2810_p12 = scmp.lt.u32.totalorder %s2806_s2, %s3198_s10 }
 0x4ae   :  { %p2812_p13 = pnand %p2810_p12, %p2807_p11 }
 0x4b0   :  { %2815 = shalt.err (!%p2812_p13)
}
 0x4b1   :  { %2051 = dma.vmem_to_hbm [thread:$0]  %s2049_s6, 32, %s3198_s10, [#allocation17]  }
 0x4b2   :  { %s2816_s15 = scalar_lea.vmem %s2039_s16, 32  ;;  %p2821_p1 = scmp.lt.s32.totalorder %s2039_s16, %s2039_s16 }
 0x4b3   :  { %p2817_p0 = scmp.ne.s32.totalorder %s2039_s16, %s2816_s15  ;;  %p2822_p2 = scmp.lt.s32.totalorder %s2816_s15, %s2816_s15 }
 0x4b5   :  { %p2823_p3 = por %p2822_p2, %p2821_p1 }
 0x4b7   :  { %p2824_p4 = pnand %p2823_p3, %p2817_p0 }
 0x4b9   :  { %2827 = shalt.err (!%p2824_p4)
}
 0x4ba   :  { %s2828_s17 = scalar_lea.hbm %s3197_s9, 32 }
 0x4bb   :  { %p2829_p5 = scmp.ne.s32.totalorder %s3197_s9, %s2828_s17  ;;  %p2832_p6 = scmp.lt.u32.totalorder %s2828_s17, %s3197_s9 }
 0x4bd   :  { %p2834_p7 = pnand %p2832_p6, %p2829_p5 }
 0x4bf   :  { %2837 = shalt.err (!%p2834_p7)
}
 0x4c0   :  { %2041 = dma.vmem_to_hbm [thread:$0]  %s2039_s16, 32, %s3197_s9, [#allocation6]  }
 0x4c1   :  { %s2910_s4 = smov [#allocation18]   ;;  %s2911_s20 = smov [#allocation19]  }
 0x4c2   :  { %s2058_s27 = sshll.u32 %s2910_s4, 4  ;;  %s2068_s21 = sshll.u32 %s2911_s20, 4  ;;  %s2059_s27 = int_to_ptr.vmem [resolvable:$true] %s2058_s27  ;;  %s2069_s21 = int_to_ptr.vmem [resolvable:$true] %s2068_s21 }
 0x4c3   :  { %s2838_s5 = scalar_lea.vmem %s2059_s27, 128  ;;  %p2843_p9 = scmp.lt.s32.totalorder %s2059_s27, %s2059_s27 }
 0x4c4   :  { %p2839_p8 = scmp.ne.s32.totalorder %s2059_s27, %s2838_s5  ;;  %p2844_p10 = scmp.lt.s32.totalorder %s2838_s5, %s2838_s5 }
 0x4c6   :  { %p2845_p11 = por %p2844_p10, %p2843_p9 }
 0x4c8   :  { %p2846_p12 = pnand %p2845_p11, %p2839_p8 }
 0x532   :  { %v2019_v50 = vpop.xlane.xlu1 %2018 }
 0x533   :  { %v2022_v51 = vadd.f32 1e-12, %v2019_v50 }
 0x535   :  { %2658 = vrsqrt.f32 %v2022_v51 }
 0x536   :  { %v2021_v52 = vpop.xlane.xlu1 %2020 }
 0x537   :  { %v2023_v53 = vadd.f32 1e-12, %v2021_v52 }
 0x539   :  { %2660 = vrsqrt.f32 %v2023_v53 }
 0x53f   :  { %v2659_v54 = vpop.eup %2658 }
 0x540   :  { %v2026_v55 = vmul.f32 %v2659_v54, %v2009_v45 }
 0x542   :  { %2030 = vst [vmem:[#allocation18] sm:$0xff] %v2026_v55 }
 0x543   :  { %v2661_v56 = vpop.eup %2660 }
 0x544   :  { %2849 = shalt.err (!%p2846_p12)
}
 0x545   :  { %s2850_s3 = scalar_lea.hbm %s3199_s11, 128 }
 0x546   :  { %p2851_p13 = scmp.ne.s32.totalorder %s3199_s11, %s2850_s3  ;;  %p2854_p0 = scmp.lt.u32.totalorder %s2850_s3, %s3199_s11 }
 0x548   :  { %p2856_p1 = pnand %p2854_p0, %p2851_p13 }
 0x54a   :  { %2859 = shalt.err (!%p2856_p1)
}
 0x54b   :  { %2061 = dma.vmem_to_hbm [thread:$0]  %s2059_s27, 128, %s3199_s11, [#allocation17]   ;;  %v2027_v57 = vmul.f32 %v2661_v56, %v3135_v48 }
 0x54c   :  { %s2860_s28 = scalar_lea.vmem %s2069_s21, 128  ;;  %p2865_p3 = scmp.lt.s32.totalorder %s2069_s21, %s2069_s21 }
 0x54d   :  { %2031 = vst [vmem:[#allocation19] sm:$0xff] %v2027_v57  ;;  %p2861_p2 = scmp.ne.s32.totalorder %s2069_s21, %s2860_s28  ;;  %p2866_p4 = scmp.lt.s32.totalorder %s2860_s28, %s2860_s28 }
 0x54f   :  { %p2867_p5 = por %p2866_p4, %p2865_p3 }
 0x551   :  { %p2868_p6 = pnand %p2867_p5, %p2861_p2 }
 0x553   :  { %2871 = shalt.err (!%p2868_p6)
}
 0x554   :  { %s2872_s13 = scalar_lea.hbm %s3200_s12, 128 }
 0x555   :  { %p2873_p7 = scmp.ne.s32.totalorder %s3200_s12, %s2872_s13  ;;  %p2876_p8 = scmp.lt.u32.totalorder %s2872_s13, %s3200_s12 }
 0x557   :  { %p2878_p9 = pnand %p2876_p8, %p2873_p7 }
 0x559   :  { %2881 = shalt.err (!%p2878_p9)
}
 0x55a   :  { %2071 = dma.vmem_to_hbm [thread:$0]  %s2069_s21, 128, %s3200_s12, [#allocation20]  }
 0x55b   :  { %2890 = dma.done.wait [#allocation6], 32  }
 0x55c   :  { %2891 = vsyncadd [#allocation6], 4294967264 }
 0x55d   :  { %2892 = dma.done.wait [#allocation17], 160  }
 0x55e   :  { %2893 = vsyncadd [#allocation17], 4294967136 }
 0x55f   :  { %2894 = dma.done.wait [#allocation20], 128  }
 0x560   :  { %2895 = vsyncadd [#allocation20], 4294967168 }
 0x561   :  { %2084 = vsyncpa [#allocation5], 1 }
 0x562   :  { %2085 = vsyncpa [#allocation8], 1 }
 0x563   :  { %2086 = vsyncpa [#allocation11], 1 }
 0x564   :  { %2087 = vsyncpa [#allocation14], 1 }
 0x565   :  { %2088 = vsyncpa [#allocation6], 1 }
 0x566   :  { %2089 = vsyncpa [#allocation17], 1 }
 0x567   :  { %2090 = vsyncpa [#allocation20], 1 }

</bundles_post_ra>
